<compile_context>
chip_gen: v7x
topology: tpu7x:2x2x1
jax: 0.10.0
libtpu: 0.0.40
codegen_flags: <defaults>
</compile_context>

<pallas_src>
import numpy as np
import jax
import jax.numpy as jnp
from jax.experimental import pallas as pl
from jax.experimental.pallas import tpu as pltpu

# ----------------------------- model sizes -----------------------------------
B = 2          # batch
L = 16         # sequence length
D_IN = 4       # raw input feature dim (input to the embedding stand-in)
D_E = 8        # embed_dim (embedding.nout)
HID = 8        # ConvContactMap hidden_dim (50 in the original; small here)
WIDTH = 7      # ConvContactMap conv width
PAD = WIDTH // 2
N_CLASSES = 5  # OrdinalRegression -> 4 logits
WCOLS = 128    # lane-padded width of the banded stage-1 weight (WIDTH*L=112)


# ============================ fused SCOPCM kernel =============================
def scopcm_kernel(xw_ref, x_ref, webig_ref, bebig_ref, wetile_ref,
                  wdif_ref, wmul_ref, b1big_ref, wcat_ref, sumd_ref,
                  b2_ref, theta_ref, beta_ref,
                  z_out_ref, cmap_out_ref, scop_out_ref):
    # ---------------- embedding (SCOPCM.forward) ----------------
    # TODO(synk): SCOPCM.embedding is an external module (only `.nout` is used
    # by SCOPCM); a deterministic linear projection x @ We + be stands in.
    # Lane-major embedding: zwide[b, j*D_E + d] = z[b, j, d]
    zwide = jnp.dot(xw_ref[...], webig_ref[...],
                    preferred_element_type=jnp.float32) + bebig_ref[...]    # (B, L*D_E)
    z_out_ref[...] = zwide

    # Row-major embedding, lane-tiled: b_all[b*L + i, j*D_E + d] = z[b, i, d]
    b_all = jnp.dot(x_ref[...], wetile_ref[...],
                    preferred_element_type=jnp.float32) + bebig_ref[...]    # (B*L, L*D_E)

    # ---------------- ConvContactMap.predict (SCOPCM.predict) ----------------
    # a_all[b*L + i, j*D_E + d] = z[b, j, d]  (sublane broadcast of zwide rows)
    a0 = jnp.broadcast_to(zwide[0:1, :], (L, L * D_E))
    a1 = jnp.broadcast_to(zwide[1:2, :], (L, L * D_E))
    a_all = jnp.concatenate([a0, a1], axis=0)                               # (B*L, L*D_E)

    dif = jnp.abs(a_all - b_all)      # |z[b,j,d] - z[b,i,d]|
    mul = a_all * b_all               #  z[b,j,d] * z[b,i,d]

    # 1x1 conv + ReLU: two MXU matmuls against kron(I_L, w1_dif / w1_mul), K=128
    hcat = (jnp.dot(dif, wdif_ref[...], preferred_element_type=jnp.float32)
            + jnp.dot(mul, wmul_ref[...], preferred_element_type=jnp.float32)
            + b1big_ref[...])
    hcat = jnp.maximum(hcat, 0.0)                                           # (B*L, L*HID)

    # 7x7 'same' conv, stage 1: column + channel contraction against the
    # banded (zero lane-padded) matrix; lanes are [dy*L + j].
    g_all = jnp.dot(hcat, wcat_ref[...], preferred_element_type=jnp.float32)  # (B*L, 128)

    # stage 2: row shifts as sublane rolls + edge masks (XLU/VPU, no MXU).
    b2 = b2_ref[0, 0]                                                       # scalar (SMEM)
    row = jax.lax.broadcasted_iota(jnp.int32, (B * L, L), 0) % L            # local row i
    cmap = jnp.zeros((B * L, L), jnp.float32) + b2
    for dy in range(WIDTH):
        if dy == PAD:
            cmap = cmap + g_all[:, dy * L:(dy + 1) * L]
        else:
            shifted = pltpu.roll(g_all, shift=(PAD - dy) % (B * L), axis=0)
            src = row + (dy - PAD)
            cmap = cmap + jnp.where((src >= 0) & (src < L),
                                    shifted[:, dy * L:(dy + 1) * L], 0.0)
    cmap_out_ref[...] = cmap                                                # (B*L, L)

    # ------------- OrdinalRegression "ssa" score (SCOPCM.score) --------------
    # TODO(synk): the L1() compare module is not given; we assume the standard
    # SSA similarity s[i, j] = -||z_x[i] - z_y[j]||_1.
    sdiff = jnp.abs(a1 - b_all[0:L, :])          # (L, L*D_E): |z_y[j,d] - z_x[i,d]|
    s = -jnp.dot(sdiff, sumd_ref[...], preferred_element_type=jnp.float32)  # (L, L)

    e1 = jnp.exp(s - jnp.max(s, axis=1, keepdims=True))
    a = e1 / jnp.sum(e1, axis=1, keepdims=True)          # softmax over axis 1
    e0 = jnp.exp(s - jnp.max(s, axis=0, keepdims=True))
    bsm = e0 / jnp.sum(e0, axis=0, keepdims=True)        # softmax over axis 0
    a = a + bsm - a * bsm
    c = jnp.sum(a * s) / jnp.sum(a)
    scop_out_ref[...] = c * theta_ref[...] + beta_ref[...]                  # (1, 4)


# ==================== host-side structured-weight plumbing ====================
def build_scopcm_weights(We, be, w1_dif, w1_mul, b1, w2):
    """Precompute the kron / banded / tiled matrices ONCE (vectorized numpy).
    Pure weight-layout plumbing derived from the module parameters."""
    We = np.asarray(We, np.float32)              # (D_IN, D_E)
    be = np.asarray(be, np.float32).reshape(1, D_E)
    w1_dif = np.asarray(w1_dif, np.float32)      # (D_E, HID)
    w1_mul = np.asarray(w1_mul, np.float32)
    b1 = np.asarray(b1, np.float32).reshape(-1)  # (HID,)
    w2 = np.asarray(w2, np.float32)              # (WIDTH, WIDTH, HID)

    eye_l = np.eye(L, dtype=np.float32)
    we_big = np.kron(eye_l, We)                  # (L*D_IN, L*D_E): lane-major embedding
    we_tile = np.tile(We, (1, L))                # (D_IN, L*D_E): lane-tiled embedding
    be_big = np.tile(be, (1, L))                 # (1, L*D_E)

    wdif_big = np.kron(eye_l, w1_dif)            # (L*D_E, L*HID)
    wmul_big = np.kron(eye_l, w1_mul)            # (L*D_E, L*HID)
    b1big = np.tile(b1[None, :], (1, L))         # (1, L*HID)

    # banded column + channel contraction of the 7x7 conv, zero-padded to 128 lanes:
    #   wcat[j'*HID + c, dy*L + j] = w2[dy, j'-j+PAD, c]   (if inside the band)
    jp = np.arange(L)[:, None, None, None]
    cc = np.arange(HID)[None, :, None, None]
    dyi = np.arange(WIDTH)[None, None, :, None]
    jj = np.arange(L)[None, None, None, :]
    dx = jp - jj + PAD
    band = (dx >= 0) & (dx < WIDTH)
    vals = np.where(band, w2[dyi, np.clip(dx, 0, WIDTH - 1), cc], 0.0)
    wcat = np.zeros((HID * L, WCOLS), np.float32)
    wcat[:, :WIDTH * L] = vals.reshape(L * HID, WIDTH * L).astype(np.float32)

    # per-position channel-sum matrix for the L1 similarity (exact 0/1 weights)
    sumd = np.kron(eye_l, np.ones((D_E, 1), np.float32))   # (L*D_E, L)

    return tuple(jnp.asarray(a) for a in
                 (we_big, we_tile, be_big, wdif_big, wmul_big, b1big, wcat, sumd))


def scopcm_forward(x, weights, b2, theta, beta):
    """Fused SCOPCM: returns (z, contact-map logits, SCOP ordinal logits)."""
    (we_big, we_tile, be_big, wdif_big, wmul_big, b1big, wcat, sumd) = weights
    xw = x.reshape(B, L * D_IN)          # (2, 64)  lane-major input
    x_flat = x.reshape(B * L, D_IN)      # (32, 4)  row-major input

    vmem = pl.BlockSpec(memory_space=pltpu.MemorySpace.VMEM)
    smem = pl.BlockSpec(memory_space=pltpu.MemorySpace.SMEM)

    z_wide, cmap_flat, scop = pl.pallas_call(
        scopcm_kernel,
        out_shape=(
            jax.ShapeDtypeStruct((B, L * D_E), jnp.float32),
            jax.ShapeDtypeStruct((B * L, L), jnp.float32),
            jax.ShapeDtypeStruct((1, N_CLASSES - 1), jnp.float32),
        ),
        in_specs=[vmem] * 10 + [smem, vmem, vmem],
        out_specs=(vmem, vmem, vmem),
    )(xw, x_flat, we_big, be_big, we_tile,
      wdif_big, wmul_big, b1big, wcat, sumd, b2, theta, beta)

    return (z_wide.reshape(B, L, D_E),
            cmap_flat.reshape(B, L, L),
            scop.reshape(-1))


# ============================ pure-JAX references =============================
def cmap_reference(z, w1_dif, w1_mul, b1, w2, b2):
    zi = z[:, :, None, :]
    zj = z[:, None, :, :]
    dif = jnp.abs(zj - zi)
    mul = zj * zi
    hp_prec = jax.lax.Precision.HIGHEST
    h = (jnp.einsum("bijd,dh->bijh", dif, w1_dif, precision=hp_prec)
         + jnp.einsum("bijd,dh->bijh", mul, w1_mul, precision=hp_prec) + b1)
    h = jnp.maximum(h, 0.0)
    hp = jnp.pad(h, ((0, 0), (PAD, PAD), (PAD, PAD), (0, 0)))
    out = jnp.zeros((z.shape[0], L, L)) + b2[0, 0]
    for dy in range(WIDTH):
        for dx in range(WIDTH):
            out = out + jnp.einsum("bijh,h->bij",
                                   hp[:, dy:dy + L, dx:dx + L, :], w2[dy, dx],
                                   precision=hp_prec)
    return out


def score_reference(z_x, z_y, theta, beta):
    s = -jnp.sum(jnp.abs(z_x[:, None, :] - z_y[None, :, :]), axis=-1)
    a = jax.nn.softmax(s, axis=1)
    b = jax.nn.softmax(s, axis=0)
    a = a + b - a * b
    c = jnp.sum(a * s) / jnp.sum(a)
    return (c * theta + beta).reshape(-1)


# ==================================== main ====================================
if __name__ == "__main__":
    key = jax.random.PRNGKey(0)
    kx, k1, k2, k3, k4, k5, k6 = jax.random.split(key, 7)

    # deterministic inputs
    x = jax.random.normal(kx, (B, L, D_IN), dtype=jnp.float32)

    # embedding (stand-in linear) params
    We = jax.random.normal(k1, (D_IN, D_E), dtype=jnp.float32) * 0.2
    be = jax.random.normal(k2, (1, D_E), dtype=jnp.float32) * 0.1

    # ConvContactMap params: 1x1 conv (dif/mul halves), 7x7 conv, biases
    w1_dif = jax.random.normal(k3, (D_E, HID), dtype=jnp.float32) * 0.2
    w1_mul = jax.random.normal(k4, (D_E, HID), dtype=jnp.float32) * 0.2
    b1 = jax.random.normal(k5, (1, HID), dtype=jnp.float32) * 0.1
    w2 = jax.random.normal(k6, (WIDTH, WIDTH, HID), dtype=jnp.float32) * 0.1
    w2 = 0.5 * (w2 + jnp.transpose(w2, (1, 0, 2)))          # ConvContactMap.clip()
    b2 = jnp.array([[0.05]], dtype=jnp.float32)

    # OrdinalRegression params (defaults: theta = ones clipped >= 0, beta = 10)
    theta = jnp.clip(jnp.ones((1, N_CLASSES - 1), dtype=jnp.float32), 0.0)
    beta = jnp.zeros((1, N_CLASSES - 1), dtype=jnp.float32) + 10.0

    # structured weights: built and uploaded ONCE, hoisted out of the forward
    weights = build_scopcm_weights(We, be, w1_dif, w1_mul, b1, w2)

    # ---- fused SCOPCM: forward (embedding), predict (cmap), score (scop) ----
    z, logits_cmap, logits_scop = scopcm_forward(x, weights, b2, theta, beta)
    for r in (z, logits_cmap, logits_scop):
        jax.block_until_ready(r)

    # correctness checks vs pure-JAX references
    z_ref = jnp.einsum("bld,de->ble", x, We,
                       precision=jax.lax.Precision.HIGHEST) + be
    np.testing.assert_allclose(np.asarray(z), np.asarray(z_ref),
                               rtol=1e-4, atol=1e-4)
    np.testing.assert_allclose(
        np.asarray(logits_cmap),
        np.asarray(cmap_reference(z_ref, w1_dif, w1_mul, b1, w2, b2)),
        rtol=1e-4, atol=1e-4)
    np.testing.assert_allclose(
        np.asarray(logits_scop),
        np.asarray(score_reference(z_ref[0], z_ref[1], theta, beta)),
        rtol=1e-4, atol=1e-4)

    print("KERNEL_OK")
</pallas_src>

<mosaic_0001>
module attributes {stable_mosaic.version = 11 : i64} {
  func.func @scopcm_kernel(%arg0: memref<2x64xf32, #tpu.memory_space<vmem>>, %arg1: memref<32x4xf32, #tpu.memory_space<vmem>>, %arg2: memref<64x128xf32, #tpu.memory_space<vmem>>, %arg3: memref<1x128xf32, #tpu.memory_space<vmem>>, %arg4: memref<4x128xf32, #tpu.memory_space<vmem>>, %arg5: memref<128x128xf32, #tpu.memory_space<vmem>>, %arg6: memref<128x128xf32, #tpu.memory_space<vmem>>, %arg7: memref<1x128xf32, #tpu.memory_space<vmem>>, %arg8: memref<128x128xf32, #tpu.memory_space<vmem>>, %arg9: memref<128x16xf32, #tpu.memory_space<vmem>>, %arg10: memref<1x1xf32, #tpu.memory_space<smem>>, %arg11: memref<1x4xf32, #tpu.memory_space<vmem>>, %arg12: memref<1x4xf32, #tpu.memory_space<vmem>>, %arg13: memref<2x128xf32, #tpu.memory_space<vmem>>, %arg14: memref<32x16xf32, #tpu.memory_space<vmem>>, %arg15: memref<1x4xf32, #tpu.memory_space<vmem>>) attributes {dimension_semantics = [], scalar_prefetch = 0 : i64, scratch_operands = 0 : i64, tpu.core_type = #tpu.core_type<tc>} {
    %c0 = arith.constant 0 : index
    %c0_0 = arith.constant 0 : index
    %0 = vector.load %arg0[%c0, %c0_0] : memref<2x64xf32, #tpu.memory_space<vmem>>, vector<2x64xf32>
    %c0_1 = arith.constant 0 : index
    %c0_2 = arith.constant 0 : index
    %1 = vector.load %arg2[%c0_1, %c0_2] : memref<64x128xf32, #tpu.memory_space<vmem>>, vector<64x128xf32>
    %cst = arith.constant dense<0.000000e+00> : vector<2x128xf32>
    %2 = tpu.matmul %0, %1, %cst {dimension_numbers = #tpu.dot_dimension_numbers<[1], [0], [0], [1], [0, 0, 1, 1], [], []>} : vector<2x64xf32>, vector<64x128xf32>, vector<2x128xf32> -> vector<2x128xf32>
    %c0_3 = arith.constant 0 : index
    %c0_4 = arith.constant 0 : index
    %3 = vector.load %arg3[%c0_3, %c0_4] : memref<1x128xf32, #tpu.memory_space<vmem>>, vector<1x128xf32>
    %4 = vector.broadcast %3 : vector<1x128xf32> to vector<2x128xf32>
    %5 = arith.addf %2, %4 : vector<2x128xf32>
    %c0_5 = arith.constant 0 : index
    %c0_6 = arith.constant 0 : index
    %6 = vector.load %arg13[%c0_5, %c0_6] : memref<2x128xf32, #tpu.memory_space<vmem>>, vector<2x128xf32>
    tpu.vector_store %arg13[%c0_5, %c0_6], %5 {strides = array<i32>} : memref<2x128xf32, #tpu.memory_space<vmem>>, vector<2x128xf32>,
    %c0_7 = arith.constant 0 : index
    %c0_8 = arith.constant 0 : index
    %7 = vector.load %arg1[%c0_7, %c0_8] : memref<32x4xf32, #tpu.memory_space<vmem>>, vector<32x4xf32>
    %c0_9 = arith.constant 0 : index
    %c0_10 = arith.constant 0 : index
    %8 = vector.load %arg4[%c0_9, %c0_10] : memref<4x128xf32, #tpu.memory_space<vmem>>, vector<4x128xf32>
    %cst_11 = arith.constant dense<0.000000e+00> : vector<32x128xf32>
    %9 = tpu.matmul %7, %8, %cst_11 {dimension_numbers = #tpu.dot_dimension_numbers<[1], [0], [0], [1], [0, 0, 1, 1], [], []>} : vector<32x4xf32>, vector<4x128xf32>, vector<32x128xf32> -> vector<32x128xf32>
    %c0_12 = arith.constant 0 : index
    %c0_13 = arith.constant 0 : index
    %10 = vector.load %arg3[%c0_12, %c0_13] : memref<1x128xf32, #tpu.memory_space<vmem>>, vector<1x128xf32>
    %11 = vector.broadcast %10 : vector<1x128xf32> to vector<32x128xf32>
    %12 = arith.addf %9, %11 : vector<32x128xf32>
    %13 = vector.extract_strided_slice %5 {offsets = [0, 0], sizes = [1, 128], strides = [1, 1]} : vector<2x128xf32> to vector<1x128xf32>
    %14 = vector.shape_cast %13 : vector<1x128xf32> to vector<1x128xf32>
    %15 = vector.broadcast %14 : vector<1x128xf32> to vector<16x128xf32>
    %16 = vector.extract_strided_slice %5 {offsets = [1, 0], sizes = [1, 128], strides = [1, 1]} : vector<2x128xf32> to vector<1x128xf32>
    %17 = vector.shape_cast %16 : vector<1x128xf32> to vector<1x128xf32>
    %18 = vector.broadcast %17 : vector<1x128xf32> to vector<16x128xf32>
    %19 = tpu.concatenate %15, %18 in 0 : vector<16x128xf32>, vector<16x128xf32> -> vector<32x128xf32>
    %20 = arith.subf %19, %12 : vector<32x128xf32>
    %21 = math.absf %20 : vector<32x128xf32>
    %22 = arith.mulf %19, %12 : vector<32x128xf32>
    %c0_14 = arith.constant 0 : index
    %c0_15 = arith.constant 0 : index
    %23 = vector.load %arg5[%c0_14, %c0_15] : memref<128x128xf32, #tpu.memory_space<vmem>>, vector<128x128xf32>
    %cst_16 = arith.constant dense<0.000000e+00> : vector<32x128xf32>
    %24 = tpu.matmul %21, %23, %cst_16 {dimension_numbers = #tpu.dot_dimension_numbers<[1], [0], [0], [1], [0, 0, 1, 1], [], []>} : vector<32x128xf32>, vector<128x128xf32>, vector<32x128xf32> -> vector<32x128xf32>
    %c0_17 = arith.constant 0 : index
    %c0_18 = arith.constant 0 : index
    %25 = vector.load %arg6[%c0_17, %c0_18] : memref<128x128xf32, #tpu.memory_space<vmem>>, vector<128x128xf32>
    %cst_19 = arith.constant dense<0.000000e+00> : vector<32x128xf32>
    %26 = tpu.matmul %22, %25, %cst_19 {dimension_numbers = #tpu.dot_dimension_numbers<[1], [0], [0], [1], [0, 0, 1, 1], [], []>} : vector<32x128xf32>, vector<128x128xf32>, vector<32x128xf32> -> vector<32x128xf32>
    %27 = arith.addf %24, %26 : vector<32x128xf32>
    %c0_20 = arith.constant 0 : index
    %c0_21 = arith.constant 0 : index
    %28 = vector.load %arg7[%c0_20, %c0_21] : memref<1x128xf32, #tpu.memory_space<vmem>>, vector<1x128xf32>
    %29 = vector.broadcast %28 : vector<1x128xf32> to vector<32x128xf32>
    %30 = arith.addf %27, %29 : vector<32x128xf32>
    %cst_22 = arith.constant 0.000000e+00 : f32
    %31 = vector.broadcast %cst_22 : f32 to vector<32x128xf32>
    %32 = arith.maximumf %30, %31 : vector<32x128xf32>
    %c0_23 = arith.constant 0 : index
    %c0_24 = arith.constant 0 : index
    %33 = vector.load %arg8[%c0_23, %c0_24] : memref<128x128xf32, #tpu.memory_space<vmem>>, vector<128x128xf32>
    %cst_25 = arith.constant dense<0.000000e+00> : vector<32x128xf32>
    %34 = tpu.matmul %32, %33, %cst_25 {dimension_numbers = #tpu.dot_dimension_numbers<[1], [0], [0], [1], [0, 0, 1, 1], [], []>} : vector<32x128xf32>, vector<128x128xf32>, vector<32x128xf32> -> vector<32x128xf32>
    %c0_26 = arith.constant 0 : index
    %c0_27 = arith.constant 0 : index
    %35 = memref.load %arg10[%c0_26, %c0_27] : memref<1x1xf32, #tpu.memory_space<smem>>
    %36 = tpu.iota {dimensions = array<i32: 0>} : vector<32x16xi32>
    %c16_i32 = arith.constant 16 : i32
    %c0_i32 = arith.constant 0 : i32
    %37 = arith.cmpi eq, %c16_i32, %c0_i32 : i32
    %c1_i32 = arith.constant 1 : i32
    %38 = arith.select %37, %c1_i32, %c16_i32 : i32
    %39 = vector.broadcast %38 : i32 to vector<32x16xi32>
    %40 = arith.remsi %36, %39 : vector<32x16xi32>
    %c0_i32_28 = arith.constant 0 : i32
    %41 = vector.broadcast %c0_i32_28 : i32 to vector<32x16xi32>
    %42 = arith.cmpi ne, %40, %41 : vector<32x16xi32>
    %c0_i32_29 = arith.constant 0 : i32
    %43 = vector.broadcast %c0_i32_29 : i32 to vector<32x16xi32>
    %44 = arith.cmpi slt, %40, %43 : vector<32x16xi32>
    %c0_i32_30 = arith.constant 0 : i32
    %45 = arith.cmpi slt, %38, %c0_i32_30 : i32
    %46 = vector.broadcast %45 : i1 to vector<32x16xi1>
    %47 = vector.broadcast %46 : vector<32x16xi1> to vector<32x16xi1>
    %48 = arith.xori %44, %47 : vector<32x16xi1>
    %49 = arith.andi %48, %42 : vector<32x16xi1>
    %50 = vector.broadcast %38 : i32 to vector<32x16xi32>
    %51 = arith.addi %40, %50 : vector<32x16xi32>
    %52 = arith.select %49, %51, %40 : vector<32x16xi1>, vector<32x16xi32>
    %cst_31 = arith.constant 0.000000e+00 : f32
    %53 = vector.broadcast %cst_31 : f32 to vector<32x16xf32>
    %54 = vector.broadcast %35 : f32 to vector<32x16xf32>
    %55 = arith.addf %53, %54 : vector<32x16xf32>
    %c3_i32 = arith.constant 3 : i32
    %56 = tpu.dynamic_rotate %34 by %c3_i32 dim 0 : vector<32x128xf32>, i32 -> vector<32x128xf32>
    %c-3_i32 = arith.constant -3 : i32
    %57 = vector.broadcast %c-3_i32 : i32 to vector<32x16xi32>
    %58 = arith.addi %52, %57 : vector<32x16xi32>
    %c0_i32_32 = arith.constant 0 : i32
    %59 = vector.broadcast %c0_i32_32 : i32 to vector<32x16xi32>
    %60 = arith.cmpi sge, %58, %59 : vector<32x16xi32>
    %c16_i32_33 = arith.constant 16 : i32
    %61 = vector.broadcast %c16_i32_33 : i32 to vector<32x16xi32>
    %62 = arith.cmpi slt, %58, %61 : vector<32x16xi32>
    %63 = arith.andi %60, %62 : vector<32x16xi1>
    %64 = vector.extract_strided_slice %56 {offsets = [0, 0], sizes = [32, 16], strides = [1, 1]} : vector<32x128xf32> to vector<32x16xf32>
    %cst_34 = arith.constant 0.000000e+00 : f32
    %65 = vector.broadcast %cst_34 : f32 to vector<32x16xf32>
    %66 = arith.select %63, %64, %65 : vector<32x16xi1>, vector<32x16xf32>
    %67 = arith.addf %55, %66 : vector<32x16xf32>
    %c2_i32 = arith.constant 2 : i32
    %68 = tpu.dynamic_rotate %34 by %c2_i32 dim 0 : vector<32x128xf32>, i32 -> vector<32x128xf32>
    %c-2_i32 = arith.constant -2 : i32
    %69 = vector.broadcast %c-2_i32 : i32 to vector<32x16xi32>
    %70 = arith.addi %52, %69 : vector<32x16xi32>
    %c0_i32_35 = arith.constant 0 : i32
    %71 = vector.broadcast %c0_i32_35 : i32 to vector<32x16xi32>
    %72 = arith.cmpi sge, %70, %71 : vector<32x16xi32>
    %c16_i32_36 = arith.constant 16 : i32
    %73 = vector.broadcast %c16_i32_36 : i32 to vector<32x16xi32>
    %74 = arith.cmpi slt, %70, %73 : vector<32x16xi32>
    %75 = arith.andi %72, %74 : vector<32x16xi1>
    %76 = vector.extract_strided_slice %68 {offsets = [0, 16], sizes = [32, 16], strides = [1, 1]} : vector<32x128xf32> to vector<32x16xf32>
    %cst_37 = arith.constant 0.000000e+00 : f32
    %77 = vector.broadcast %cst_37 : f32 to vector<32x16xf32>
    %78 = arith.select %75, %76, %77 : vector<32x16xi1>, vector<32x16xf32>
    %79 = arith.addf %67, %78 : vector<32x16xf32>
    %c1_i32_38 = arith.constant 1 : i32
    %80 = tpu.dynamic_rotate %34 by %c1_i32_38 dim 0 : vector<32x128xf32>, i32 -> vector<32x128xf32>
    %c-1_i32 = arith.constant -1 : i32
    %81 = vector.broadcast %c-1_i32 : i32 to vector<32x16xi32>
    %82 = arith.addi %52, %81 : vector<32x16xi32>
    %c0_i32_39 = arith.constant 0 : i32
    %83 = vector.broadcast %c0_i32_39 : i32 to vector<32x16xi32>
    %84 = arith.cmpi sge, %82, %83 : vector<32x16xi32>
    %c16_i32_40 = arith.constant 16 : i32
    %85 = vector.broadcast %c16_i32_40 : i32 to vector<32x16xi32>
    %86 = arith.cmpi slt, %82, %85 : vector<32x16xi32>
    %87 = arith.andi %84, %86 : vector<32x16xi1>
    %88 = vector.extract_strided_slice %80 {offsets = [0, 32], sizes = [32, 16], strides = [1, 1]} : vector<32x128xf32> to vector<32x16xf32>
    %cst_41 = arith.constant 0.000000e+00 : f32
    %89 = vector.broadcast %cst_41 : f32 to vector<32x16xf32>
    %90 = arith.select %87, %88, %89 : vector<32x16xi1>, vector<32x16xf32>
    %91 = arith.addf %79, %90 : vector<32x16xf32>
    %92 = vector.extract_strided_slice %34 {offsets = [0, 48], sizes = [32, 16], strides = [1, 1]} : vector<32x128xf32> to vector<32x16xf32>
    %93 = arith.addf %91, %92 : vector<32x16xf32>
    %c31_i32 = arith.constant 31 : i32
    %94 = tpu.dynamic_rotate %34 by %c31_i32 dim 0 : vector<32x128xf32>, i32 -> vector<32x128xf32>
    %c1_i32_42 = arith.constant 1 : i32
    %95 = vector.broadcast %c1_i32_42 : i32 to vector<32x16xi32>
    %96 = arith.addi %52, %95 : vector<32x16xi32>
    %c0_i32_43 = arith.constant 0 : i32
    %97 = vector.broadcast %c0_i32_43 : i32 to vector<32x16xi32>
    %98 = arith.cmpi sge, %96, %97 : vector<32x16xi32>
    %c16_i32_44 = arith.constant 16 : i32
    %99 = vector.broadcast %c16_i32_44 : i32 to vector<32x16xi32>
    %100 = arith.cmpi slt, %96, %99 : vector<32x16xi32>
    %101 = arith.andi %98, %100 : vector<32x16xi1>
    %102 = vector.extract_strided_slice %94 {offsets = [0, 64], sizes = [32, 16], strides = [1, 1]} : vector<32x128xf32> to vector<32x16xf32>
    %cst_45 = arith.constant 0.000000e+00 : f32
    %103 = vector.broadcast %cst_45 : f32 to vector<32x16xf32>
    %104 = arith.select %101, %102, %103 : vector<32x16xi1>, vector<32x16xf32>
    %105 = arith.addf %93, %104 : vector<32x16xf32>
    %c30_i32 = arith.constant 30 : i32
    %106 = tpu.dynamic_rotate %34 by %c30_i32 dim 0 : vector<32x128xf32>, i32 -> vector<32x128xf32>
    %c2_i32_46 = arith.constant 2 : i32
    %107 = vector.broadcast %c2_i32_46 : i32 to vector<32x16xi32>
    %108 = arith.addi %52, %107 : vector<32x16xi32>
    %c0_i32_47 = arith.constant 0 : i32
    %109 = vector.broadcast %c0_i32_47 : i32 to vector<32x16xi32>
    %110 = arith.cmpi sge, %108, %109 : vector<32x16xi32>
    %c16_i32_48 = arith.constant 16 : i32
    %111 = vector.broadcast %c16_i32_48 : i32 to vector<32x16xi32>
    %112 = arith.cmpi slt, %108, %111 : vector<32x16xi32>
    %113 = arith.andi %110, %112 : vector<32x16xi1>
    %114 = vector.extract_strided_slice %106 {offsets = [0, 80], sizes = [32, 16], strides = [1, 1]} : vector<32x128xf32> to vector<32x16xf32>
    %cst_49 = arith.constant 0.000000e+00 : f32
    %115 = vector.broadcast %cst_49 : f32 to vector<32x16xf32>
    %116 = arith.select %113, %114, %115 : vector<32x16xi1>, vector<32x16xf32>
    %117 = arith.addf %105, %116 : vector<32x16xf32>
    %c29_i32 = arith.constant 29 : i32
    %118 = tpu.dynamic_rotate %34 by %c29_i32 dim 0 : vector<32x128xf32>, i32 -> vector<32x128xf32>
    %c3_i32_50 = arith.constant 3 : i32
    %119 = vector.broadcast %c3_i32_50 : i32 to vector<32x16xi32>
    %120 = arith.addi %52, %119 : vector<32x16xi32>
    %c0_i32_51 = arith.constant 0 : i32
    %121 = vector.broadcast %c0_i32_51 : i32 to vector<32x16xi32>
    %122 = arith.cmpi sge, %120, %121 : vector<32x16xi32>
    %c16_i32_52 = arith.constant 16 : i32
    %123 = vector.broadcast %c16_i32_52 : i32 to vector<32x16xi32>
    %124 = arith.cmpi slt, %120, %123 : vector<32x16xi32>
    %125 = arith.andi %122, %124 : vector<32x16xi1>
    %126 = vector.extract_strided_slice %118 {offsets = [0, 96], sizes = [32, 16], strides = [1, 1]} : vector<32x128xf32> to vector<32x16xf32>
    %cst_53 = arith.constant 0.000000e+00 : f32
    %127 = vector.broadcast %cst_53 : f32 to vector<32x16xf32>
    %128 = arith.select %125, %126, %127 : vector<32x16xi1>, vector<32x16xf32>
    %129 = arith.addf %117, %128 : vector<32x16xf32>
    %c0_54 = arith.constant 0 : index
    %c0_55 = arith.constant 0 : index
    %130 = vector.load %arg14[%c0_54, %c0_55] : memref<32x16xf32, #tpu.memory_space<vmem>>, vector<32x16xf32>
    tpu.vector_store %arg14[%c0_54, %c0_55], %129 {strides = array<i32>} : memref<32x16xf32, #tpu.memory_space<vmem>>, vector<32x16xf32>,
    %131 = vector.extract_strided_slice %12 {offsets = [0, 0], sizes = [16, 128], strides = [1, 1]} : vector<32x128xf32> to vector<16x128xf32>
    %132 = arith.subf %18, %131 : vector<16x128xf32>
    %133 = math.absf %132 : vector<16x128xf32>
    %c0_56 = arith.constant 0 : index
    %c0_57 = arith.constant 0 : index
    %134 = vector.load %arg9[%c0_56, %c0_57] : memref<128x16xf32, #tpu.memory_space<vmem>>, vector<128x16xf32>
    %cst_58 = arith.constant dense<0.000000e+00> : vector<16x16xf32>
    %135 = tpu.matmul %133, %134, %cst_58 {dimension_numbers = #tpu.dot_dimension_numbers<[1], [0], [0], [1], [0, 0, 1, 1], [], []>} : vector<16x128xf32>, vector<128x16xf32>, vector<16x16xf32> -> vector<16x16xf32>
    %cst_59 = arith.constant 0.000000e+00 : f32
    %136 = vector.broadcast %cst_59 : f32 to vector<16x16xf32>
    %137 = arith.subf %136, %135 : vector<16x16xf32>
    %cst_60 = arith.constant dense<0xFF800000> : vector<16xf32>
    %138 = vector.multi_reduction <maximumf>, %137, %cst_60 [1] : vector<16x16xf32> to vector<16xf32>
    %139 = vector.shape_cast %138 : vector<16xf32> to vector<16x1xf32>
    %140 = vector.broadcast %139 : vector<16x1xf32> to vector<16x16xf32>
    %141 = arith.subf %137, %140 : vector<16x16xf32>
    %142 = math.exp %141 : vector<16x16xf32>
    %cst_61 = arith.constant dense<0.000000e+00> : vector<16xf32>
    %143 = vector.multi_reduction <add>, %142, %cst_61 [1] : vector<16x16xf32> to vector<16xf32>
    %144 = vector.shape_cast %143 : vector<16xf32> to vector<16x1xf32>
    %145 = vector.broadcast %144 : vector<16x1xf32> to vector<16x16xf32>
    %146 = arith.divf %142, %145 : vector<16x16xf32>
    %cst_62 = arith.constant dense<0xFF800000> : vector<16xf32>
    %147 = vector.multi_reduction <maximumf>, %137, %cst_62 [0] : vector<16x16xf32> to vector<16xf32>
    %148 = vector.shape_cast %147 : vector<16xf32> to vector<1x16xf32>
    %149 = vector.broadcast %148 : vector<1x16xf32> to vector<16x16xf32>
    %150 = arith.subf %137, %149 : vector<16x16xf32>
    %151 = math.exp %150 : vector<16x16xf32>
    %cst_63 = arith.constant dense<0.000000e+00> : vector<16xf32>
    %152 = vector.multi_reduction <add>, %151, %cst_63 [0] : vector<16x16xf32> to vector<16xf32>
    %153 = vector.shape_cast %152 : vector<16xf32> to vector<1x16xf32>
    %154 = vector.broadcast %153 : vector<1x16xf32> to vector<16x16xf32>
    %155 = arith.divf %151, %154 : vector<16x16xf32>
    %156 = arith.addf %146, %155 : vector<16x16xf32>
    %157 = arith.mulf %146, %155 : vector<16x16xf32>
    %158 = arith.subf %156, %157 : vector<16x16xf32>
    %159 = arith.mulf %158, %137 : vector<16x16xf32>
    %160 = vector.shape_cast %159 : vector<16x16xf32> to vector<1x16x16xf32>
    %cst_64 = arith.constant dense<0.000000e+00> : vector<1xf32>
    %161 = vector.multi_reduction <add>, %160, %cst_64 [1, 2] : vector<1x16x16xf32> to vector<1xf32>
    %162 = vector.shape_cast %161 : vector<1xf32> to vector<1x1x1xf32>
    %163 = vector.extract %162[0, 0, 0] : f32 from vector<1x1x1xf32>
    %164 = vector.shape_cast %158 : vector<16x16xf32> to vector<1x16x16xf32>
    %cst_65 = arith.constant dense<0.000000e+00> : vector<1xf32>
    %165 = vector.multi_reduction <add>, %164, %cst_65 [1, 2] : vector<1x16x16xf32> to vector<1xf32>
    %166 = vector.shape_cast %165 : vector<1xf32> to vector<1x1x1xf32>
    %167 = vector.extract %166[0, 0, 0] : f32 from vector<1x1x1xf32>
    %168 = arith.divf %163, %167 : f32
    %c0_66 = arith.constant 0 : index
    %c0_67 = arith.constant 0 : index
    %169 = vector.load %arg11[%c0_66, %c0_67] : memref<1x4xf32, #tpu.memory_space<vmem>>, vector<1x4xf32>
    %170 = vector.broadcast %168 : f32 to vector<1x4xf32>
    %171 = arith.mulf %170, %169 : vector<1x4xf32>
    %c0_68 = arith.constant 0 : index
    %c0_69 = arith.constant 0 : index
    %172 = vector.load %arg12[%c0_68, %c0_69] : memref<1x4xf32, #tpu.memory_space<vmem>>, vector<1x4xf32>
    %173 = arith.addf %171, %172 : vector<1x4xf32>
    %c0_70 = arith.constant 0 : index
    %c0_71 = arith.constant 0 : index
    %174 = vector.load %arg15[%c0_70, %c0_71] : memref<1x4xf32, #tpu.memory_space<vmem>>, vector<1x4xf32>
    tpu.vector_store %arg15[%c0_70, %c0_71], %173 {strides = array<i32>} : memref<1x4xf32, #tpu.memory_space<vmem>>, vector<1x4xf32>,
    return
  }
}

</mosaic_0001>

<bundles_post_ra>
// kernel: tpu_custom_call.1
= control target key start
LH: loop header
LB: loop body
LE: loop exit
PB: predicated region body
PF: predicated region fallthrough
CT: control target
= control target key end

     0   :  { %22 = vsyncpa [#allocation4], 0  ;;  %s2442_s0 = inlined_call_operand.vmem [shape: f32[2,64], index: 0, kind: input, shape index: {}]   ;;  %s2443_s1 = inlined_call_operand.vmem [shape: f32[32,4], index: 1, kind: input, shape index: {}]   ;;  %s2444_s2 = inlined_call_operand.vmem [shape: f32[64,128], index: 2, kind: input, shape index: {}]   ;;  %s2445_s3 = inlined_call_operand.hbm [shape: f32[1,128], index: 3, kind: input, shape index: {}]   ;;  %s2446_s4 = inlined_call_operand.hbm [shape: f32[4,128], index: 4, kind: input, shape index: {}]   ;;  %s2447_s5 = inlined_call_operand.vmem [shape: f32[128,128], index: 5, kind: input, shape index: {}]   ;;  %s2448_s6 = inlined_call_operand.hbm [shape: f32[128,128], index: 6, kind: input, shape index: {}]   ;;  %s2449_s7 = inlined_call_operand.hbm [shape: f32[1,128], index: 7, kind: input, shape index: {}]   ;;  %s2450_s8 = inlined_call_operand.hbm [shape: f32[128,128], index: 8, kind: input, shape index: {}]   ;;  %s2451_s9 = inlined_call_operand.vmem [shape: f32[128,16], index: 9, kind: input, shape index: {}]   ;;  %s2452_s10 = inlined_call_operand.<no memory space> [shape: f32[1,1], index: 10, kind: input, shape index: {}]   ;;  %s2453_s11 = inlined_call_operand.vmem [shape: f32[1,4], index: 11, kind: input, shape index: {}]   ;;  %s2454_s12 = inlined_call_operand.vmem [shape: f32[1,4], index: 12, kind: input, shape index: {}]   ;;  %s2455_s13 = inlined_call_operand.hbm [shape: f32[2,128], index: 13, kind: output, shape index: {0}]   ;;  %s2456_s14 = inlined_call_operand.vmem [shape: f32[32,16], index: 14, kind: output, shape index: {1}]   ;;  %s2457_s15 = inlined_call_operand.hbm [shape: f32[1,4], index: 15, kind: output, shape index: {2}]  }
   0x1   :  { %23 = vsyncpa [#allocation7], 0 }
   0x2   :  { %24 = vsyncpa [#allocation10], 0 }
   0x3   :  { %25 = vsyncpa [#allocation5], 0 }
   0x4   :  { %26 = vsyncpa [#allocation14], 0  ;;  %s1861_s18 = smov [#allocation6]   ;;  %s1862_s20 = smov [#allocation9]  }
   0x5   :  { %s49_s19 = sshll.u32 %s1861_s18, 4  ;;  %s73_s21 = sshll.u32 %s1862_s20, 4  ;;  %s50_s19 = int_to_ptr.vmem [resolvable:$true] %s49_s19  ;;  %s74_s21 = int_to_ptr.vmem [resolvable:$true] %s73_s21 }
   0x6   :  { %s1697_s24 = scalar_lea.hbm %s2446_s4, 64 }
   0x7   :  { %p1698_p0 = scmp.ne.s32.totalorder %s2446_s4, %s1697_s24  ;;  %p1701_p1 = scmp.lt.u32.totalorder %s1697_s24, %s2446_s4 }
   0x9   :  { %p1703_p2 = pnand %p1701_p1, %p1698_p0 }
   0xb   :  { %1706 = shalt.err (!%p1703_p2)
}
   0xc   :  { %s1707_s29 = scalar_lea.vmem %s50_s19, 64  ;;  %p1712_p4 = scmp.lt.s32.totalorder %s50_s19, %s50_s19 }
   0xd   :  { %p1708_p3 = scmp.ne.s32.totalorder %s50_s19, %s1707_s29  ;;  %p1713_p5 = scmp.lt.s32.totalorder %s1707_s29, %s1707_s29 }
   0xf   :  { %p1714_p6 = por %p1713_p5, %p1712_p4 }
  0x11   :  { %p1715_p7 = pnand %p1714_p6, %p1708_p3 }
  0x13   :  { %1718 = shalt.err (!%p1715_p7)
}
  0x14   :  { %52 = dma.hbm_to_vmem [thread:$0]  %s2446_s4, 64, %s50_s19, [#allocation7]  }
  0x15   :  { %s1719_s20 = scalar_lea.hbm %s2449_s7, 16 }
  0x16   :  { %p1720_p8 = scmp.ne.s32.totalorder %s2449_s7, %s1719_s20  ;;  %p1723_p9 = scmp.lt.u32.totalorder %s1719_s20, %s2449_s7 }
  0x18   :  { %p1725_p10 = pnand %p1723_p9, %p1720_p8 }
  0x1a   :  { %1728 = shalt.err (!%p1725_p10)
}
  0x1b   :  { %s1729_s26 = scalar_lea.vmem %s74_s21, 16  ;;  %s1733_s27 = scalar_lea.vmem %s74_s21, 32 }
  0x1c   :  { %p1730_p11 = scmp.ne.s32.totalorder %s74_s21, %s1729_s26  ;;  %p1734_p12 = scmp.lt.s32.totalorder %s74_s21, %s74_s21 }
  0x1d   :  { %p1735_p13 = scmp.lt.s32.totalorder %s1733_s27, %s1729_s26 }
  0x1f   :  { %p1736_p0 = por %p1735_p13, %p1734_p12 }
  0x21   :  { %p1737_p1 = pnand %p1736_p0, %p1730_p11 }
  0x23   :  { %1740 = shalt.err (!%p1737_p1)
}
  0x24   :  { %76 = dma.hbm_to_vmem [thread:$0]  %s2449_s7, 16, %s74_s21, [#allocation10]  }
  0x25   :  { %s1863_s28 = smov [#allocation3]   ;;  %s1864_s30 = smov [#allocation8]  }
  0x26   :  { %s39_s29 = sshll.u32 %s1863_s28, 4  ;;  %s60_s16 = sshll.u32 %s1864_s30, 4  ;;  %s40_s29 = int_to_ptr.vmem [resolvable:$true] %s39_s29  ;;  %s1983_s16 = int_to_ptr.vmem [resolvable:$true] %s60_s16 }
  0x27   :  { %s1741_s20 = scalar_lea.hbm %s2445_s3, 16 }
  0x28   :  { %p1742_p2 = scmp.ne.s32.totalorder %s2445_s3, %s1741_s20  ;;  %p1745_p3 = scmp.lt.u32.totalorder %s1741_s20, %s2445_s3 }
  0x2a   :  { %p1747_p4 = pnand %p1745_p3, %p1742_p2 }
  0x2c   :  { %1750 = shalt.err (!%p1747_p4)
}
  0x2d   :  { %s1751_s7 = scalar_lea.vmem %s40_s29, 16  ;;  %s1755_s21 = scalar_lea.vmem %s40_s29, 32 }
  0x2e   :  { %p1752_p5 = scmp.ne.s32.totalorder %s40_s29, %s1751_s7  ;;  %p1756_p6 = scmp.lt.s32.totalorder %s40_s29, %s40_s29 }
  0x2f   :  { %p1757_p7 = scmp.lt.s32.totalorder %s1755_s21, %s1751_s7 }
  0x31   :  { %p1758_p8 = por %p1757_p7, %p1756_p6 }
  0x33   :  { %p1759_p9 = pnand %p1758_p8, %p1752_p5 }
  0x35   :  { %1762 = shalt.err (!%p1759_p9)
}
  0x36   :  { %42 = dma.hbm_to_vmem [thread:$0]  %s2445_s3, 16, %s40_s29, [#allocation4]  }
  0x37   :  { %s1763_s28 = scalar_lea.hbm %s2448_s6, 2048 }
  0x38   :  { %p1764_p10 = scmp.ne.s32.totalorder %s2448_s6, %s1763_s28  ;;  %p1767_p11 = scmp.lt.u32.totalorder %s1763_s28, %s2448_s6 }
  0x3a   :  { %p1769_p12 = pnand %p1767_p11, %p1764_p10 }
  0x3c   :  { %1772 = shalt.err (!%p1769_p12)
}
  0x3d   :  { %s1773_s22 = scalar_lea.vmem %s1983_s16, 2048  ;;  %p1778_p0 = scmp.lt.s32.totalorder %s1983_s16, %s1983_s16 }
  0x3e   :  { %p1774_p13 = scmp.ne.s32.totalorder %s1983_s16, %s1773_s22  ;;  %p1779_p1 = scmp.lt.s32.totalorder %s1773_s22, %s1773_s22 }
  0x40   :  { %p1780_p2 = por %p1779_p1, %p1778_p0 }
  0x42   :  { %p1781_p3 = pnand %p1780_p2, %p1774_p13 }
  0x44   :  { %1784 = shalt.err (!%p1781_p3)
}
  0x45   :  { %s1865_s3 = smov 128   ;;  %s1866_s29 = smov 8  }
  0x46   :  { %66 = dma.hbm_to_vmem [thread:$0]  %s2448_s6, 2048, %s1983_s16, [#allocation7], %s1865_s3, %s1865_s3, %s1866_s29  }
  0x47   :  { %s1867_s25 = smov [#allocation11]   ;;  %s1785_s27 = scalar_lea.hbm %s2450_s8, 2048 }
  0x48   :  { %s82_s7 = sshll.u32 %s1867_s25, 4  ;;  %p1786_p4 = scmp.ne.s32.totalorder %s2450_s8, %s1785_s27  ;;  %s83_s7 = int_to_ptr.vmem [resolvable:$true] %s82_s7 }
  0x49   :  { %p1789_p5 = scmp.lt.u32.totalorder %s1785_s27, %s2450_s8 }
  0x4b   :  { %p1791_p6 = pnand %p1789_p5, %p1786_p4 }
  0x4d   :  { %1794 = shalt.err (!%p1791_p6)
}
  0x4e   :  { %s1795_s17 = scalar_lea.vmem %s83_s7, 2048  ;;  %p1800_p8 = scmp.lt.s32.totalorder %s83_s7, %s83_s7 }
  0x4f   :  { %p1796_p7 = scmp.ne.s32.totalorder %s83_s7, %s1795_s17  ;;  %p1801_p9 = scmp.lt.s32.totalorder %s1795_s17, %s1795_s17 }
  0x51   :  { %p1802_p10 = por %p1801_p9, %p1800_p8 }
  0x53   :  { %p1803_p11 = pnand %p1802_p10, %p1796_p7 }
  0x55   :  { %1806 = shalt.err (!%p1803_p11)
}
  0x56   :  { %88 = dma.hbm_to_vmem [thread:$0]  %s2450_s8, 2048, %s83_s7, [#allocation10], %s1865_s3, %s1865_s3, %s1866_s29  }
  0x57   :  { %1851 = dma.done.wait [#allocation4], 16  }
  0x58   :  { %1852 = vsyncadd [#allocation4], 4294967280 }
  0x59   :  { %1853 = dma.done.wait [#allocation7], 2112  }
  0x5a   :  { %1854 = vsyncadd [#allocation7], 4294965184 }
  0x5b   :  { %1855 = dma.done.wait [#allocation10], 2064  }
  0x5c   :  { %1856 = vsyncadd [#allocation10], 4294965232  ;;  %v1868_v0 = vmov 0.0|0.0   ;;  %vm1869_vm0 = vmmov 0   ;;  %v1870_v1 = vmov 0.0   ;;  %v113_v2 = vld [vmem:[%s2444_s2] sm:$0xff] }
  0x5d   :  { %1513 = vmatprep.subr.bf16.mxu0 %v1868_v0  ;;  %1353 = vmatprep.mubr.msk.f32.mxu0 %vm1869_vm0, %v1870_v1  ;;  %v114_v3 = vld [vmem:[%s2444_s2 + $0x8] sm:$0xff]  ;;  %v115_v4 = vld [vmem:[%s2444_s2 + $0x10] sm:$0xff]  ;;  %vm228_vm1 = vcmask 1043456   ;;  %v116_v6 = vld [vmem:[%s2444_s2 + $0x18] sm:$0xff]  ;;  %vm215_vm2 = vcmask 31744   ;;  %vm128_vm3 = vcmask 523264  }
  0x5e   :  { %v1514_v5 = vpack.c.bf16 %v114_v3, %v113_v2  ;;  %v207_v7 = vld [vmem:[#allocation6] sm:$0xf]  ;;  %v1517_v9 = vpack.c.bf16 %v116_v6, %v115_v4  ;;  %v204_v11 = vld [vmem:[%s2443_s1 + $0x8] sm:$0xff]  ;;  %v205_v13 = vld [vmem:[%s2443_s1 + $0x10] sm:$0xff]  ;;  %v317_v6 = vlaneseq  ;;  %vm1009_vm12 = vcmask 130048   ;;  %s1872_s16 = smov 96  }
  0x5f   :  { %v203_v8 = vld [vmem:[%s2443_s1] sm:$0xff]  ;;  %1356 = vmatprep.subr.msk.mxu1 %vm228_vm1, %v207_v7  ;;  %v118_v12 = vld [vmem:[%s2444_s2 + $0x28] sm:$0xff]  ;;  %v355_v16 = vld [vmem:[#allocation8 + $0x10] sm:$0xff]  ;;  %s1873_s18 = smov 80   ;;  %s1874_s20 = smov 64  }
  0x60   :  { %1515 = vmatpush3.bf16.msra.mxu0 %v1514_v5  ;;  %v117_v10 = vld [vmem:[%s2444_s2 + $0x20] sm:$0xff]  ;;  %1357 = vmatpush3.msk.msra.mxu1 %vm228_vm1, %v207_v7  ;;  %v354_v15 = vld [vmem:[#allocation8 + $0x8] sm:$0xff]  ;;  %v206_v21 = vld [vmem:[%s2443_s1 + $0x18] sm:$0xff]  ;;  %s1875_s22 = smov 48   ;;  %s1876_s23 = smov 32  }
  0x61   :  { %1516 = vmatprep.subr.bf16.mxu0 %v1868_v0  ;;  %v353_v14 = vld [vmem:[#allocation8] sm:$0xff]  ;;  %1358 = vmatprep.mubr.msk.f32.mxu1 %vm215_vm2, %v203_v8  ;;  %v356_v17 = vld [vmem:[#allocation8 + $0x18] sm:$0xff]  ;;  %v1520_v20 = vpack.c.bf16 %v118_v12, %v117_v10  ;;  %v358_v23 = vld [vmem:[#allocation8 + $0x28] sm:$0xff]  ;;  %s1877_s1 = smov [#allocation12]  }
  0x62   :  { %1359 = vmatmul.mubr.msk.f32.vlgmr.msra.gmra.mrb[0].mxu1 %vm215_vm2, %v204_v11  ;;  %v1525_v18 = vpack.c.bf16 %v354_v15, %v353_v14  ;;  %v1529_v19 = vpack.c.bf16 %v356_v17, %v355_v16  ;;  %v357_v22 = vld [vmem:[#allocation8 + $0x20] sm:$0xff]  ;;  %v119_v24 = vld [vmem:[%s2444_s2 + $0x30] sm:$0xff]  ;;  %v120_v25 = vld [vmem:[%s2444_s2 + $0x38] sm:$0xff]  ;;  %s1207_s8 = sshll.u32 %s1877_s1, 4  ;;  %s1208_s8 = int_to_ptr.vmem [resolvable:$true] %s1207_s8 }
  0x63   :  { %1361 = vmatprep.mubr.msk.f32.mxu1 %vm215_vm2, %v205_v13  ;;  %v1533_v26 = vpack.c.bf16 %v358_v23, %v357_v22  ;;  %v1523_v27 = vpack.c.bf16 %v120_v25, %v119_v24  ;;  %v359_v28 = vld [vmem:[#allocation8 + $0x30] sm:$0xff]  ;;  %v360_v29 = vld [vmem:[#allocation8 + $0x38] sm:$0xff]  ;;  %v361_v32 = vld [vmem:[#allocation8 + $0x40] sm:$0xff]  ;;  %p1812_p13 = scmp.lt.s32.totalorder %s1208_s8, %s1208_s8 }
  0x64   :  { %1518 = vmatpush3.bf16.msra.mxu0 %v1517_v9  ;;  %1526 = vmatprep.subr.bf16.mxu1 %v1525_v18  ;;  %v1537_v30 = vpack.c.bf16 %v360_v29, %v359_v28  ;;  %v112_v31 = vld [vmem:[%s2442_s0] sm:$0x3]  ;;  %v362_v33 = vld [vmem:[#allocation8 + $0x48] sm:$0xff]  ;;  %v363_v35 = vld [vmem:[#allocation8 + $0x50] sm:$0xff]  ;;  %v2078_v9 = vshrl.u32 %v317_v6, 7  ;;  %s1807_s0 = scalar_lea.vmem %s1208_s8, 32 }
  0x65   :  { %1519 = vmatprep.subr.bf16.mxu0 %v1868_v0  ;;  %1528 = vmatpush3.bf16.msra.mxu1 %v1525_v18  ;;  %v1541_v34 = vpack.c.bf16 %v362_v33, %v361_v32  ;;  %v364_v36 = vld [vmem:[#allocation8 + $0x58] sm:$0xff]  ;;  %v365_v38 = vld [vmem:[#allocation8 + $0x60] sm:$0xff]  ;;  %v366_v39 = vld [vmem:[#allocation8 + $0x68] sm:$0xff]  ;;  %p1808_p12 = scmp.ne.s32.totalorder %s1208_s8, %s1807_s0  ;;  %p1813_p0 = scmp.lt.s32.totalorder %s1807_s0, %s1807_s0 }
  0x66   :  { %1362 = vmatmul.mubr.msk.f32.gmra.mrb[2].mxu1 %vm215_vm2, %v206_v21  ;;  %1530 = vmatprep.subr.bf16.mxu1 %v1529_v19  ;;  %v1545_v37 = vpack.c.bf16 %v364_v36, %v363_v35  ;;  %v1549_v40 = vpack.c.bf16 %v366_v39, %v365_v38  ;;  %v367_v41 = vld [vmem:[#allocation8 + $0x70] sm:$0xff]  ;;  %v368_v42 = vld [vmem:[#allocation8 + $0x78] sm:$0xff]  ;;  %v338_v45 = vld [vmem:[%s2447_s5 + $0x8] sm:$0xff]  ;;  %v319_v11 = vsub.s32 0, %v2078_v9  ;;  %v323_v12 = vsub.s32 1, %v2078_v9 }
  0x67   :  { %v1553_v43 = vpack.c.bf16 %v368_v42, %v367_v41  ;;  %v337_v44 = vld [vmem:[%s2447_s5] sm:$0xff]  ;;  %v554_v47 = vld [vmem:[#allocation11] sm:$0xff]  ;;  %v555_v48 = vld [vmem:[#allocation11 + $0x8] sm:$0xff]  ;;  %vm748_vm4 = vcmp.lt.s32.totalorder %v2078_v9, 2  ;;  %vm797_vm5 = vcmp.lt.s32.totalorder %v2078_v9, 1  ;;  %vm866_vm6 = vcmp.lt.s32.totalorder %v2078_v9, 7  ;;  %p1814_p1 = por %p1813_p0, %p1812_p13 }
  0x68   :  { %1521 = vmatpush3.bf16.msra.mxu0 %v1520_v20  ;;  %v2075_v46 = vpack.c.bf16 %v338_v45, %v337_v44  ;;  %v556_v49 = vld [vmem:[#allocation11 + $0x10] sm:$0xff]  ;;  %v1589_v50 = vpack.c.bf16 %v555_v48, %v554_v47  ;;  %v557_v51 = vld [vmem:[#allocation11 + $0x18] sm:$0xff]  ;;  %v558_v53 = vld [vmem:[#allocation11 + $0x20] sm:$0xff]  ;;  %vm915_vm7 = vcmp.lt.s32.totalorder %v2078_v9, 6  ;;  %vm964_vm8 = vcmp.lt.s32.totalorder %v2078_v9, 5 }
  0x69   :  { %1522 = vmatprep.subr.bf16.mxu0 %v1868_v0  ;;  %1532 = vmatpush3.bf16.msra.mxu1 %v1529_v19  ;;  %v1593_v52 = vpack.c.bf16 %v557_v51, %v556_v49  ;;  %v559_v54 = vld [vmem:[#allocation11 + $0x28] sm:$0xff]  ;;  %v560_v56 = vld [vmem:[#allocation11 + $0x30] sm:$0xff]  ;;  %v561_v57 = vld [vmem:[#allocation11 + $0x38] sm:$0xff]  ;;  %vm715_vm9 = vcmp.lt.s32.totalorder %v2078_v9, 3  ;;  %p1815_p2 = pnand %p1814_p1, %p1808_p12 }
  0x6a   :  { %1534 = vmatprep.subr.bf16.mxu1 %v1533_v26  ;;  %v1597_v55 = vpack.c.bf16 %v559_v54, %v558_v53  ;;  %v1601_v58 = vpack.c.bf16 %v561_v57, %v560_v56  ;;  %v562_v59 = vld [vmem:[#allocation11 + $0x40] sm:$0xff]  ;;  %v563_v60 = vld [vmem:[#allocation11 + $0x48] sm:$0xff]  ;;  %v564_v62 = vld [vmem:[#allocation11 + $0x50] sm:$0xff] }
  0x6b   :  { %v1605_v61 = vpack.c.bf16 %v563_v60, %v562_v59  ;;  %v565_v63 = vld [vmem:[#allocation11 + $0x58] sm:$0xff]  ;;  %v566_v1 = vld [vmem:[#allocation11 + $0x60] sm:$0xff]  ;;  %v567_v2 = vld [vmem:[#allocation11 + $0x68] sm:$0xff] }
  0x6c   :  { %1524 = vmatpush3.bf16.msra.mxu0 %v1523_v27  ;;  %v1609_v0 = vpack.c.bf16 %v565_v63, %v564_v62  ;;  %v1613_v3 = vpack.c.bf16 %v567_v2, %v566_v1  ;;  %v1238_v10 = vld [vmem:[#allocation3] ss:$0 sm:$0xff]  ;;  %v339_v22 = vld [vmem:[%s2447_s5 + $0x10] sm:$0xff]  ;;  %v340_v23 = vld [vmem:[%s2447_s5 + $0x18] sm:$0xff] }
  0x6d   :  { %1536 = vmatpush3.bf16.msra.mxu1 %v1533_v26  ;;  %1590 = vmatprep.subr.bf16.mxu0 %v1589_v50  ;;  %v1561_v32 = vpack.c.bf16 %v340_v23, %v339_v22  ;;  %v341_v35 = vld [vmem:[%s2447_s5 + $0x20] sm:$0xff]  ;;  %v342_v36 = vld [vmem:[%s2447_s5 + $0x28] sm:$0xff]  ;;  %v343_v39 = vld [vmem:[%s2447_s5 + $0x30] sm:$0xff] }
  0x6e   :  { %1538 = vmatprep.subr.bf16.mxu1 %v1537_v30  ;;  %v345_v42 = vld [vmem:[%s2447_s5 + $0x40] sm:$0xff]  ;;  %v347_v45 = vld [vmem:[%s2447_s5 + $0x50] sm:$0xff]  ;;  %v350_v49 = vld [vmem:[%s2447_s5 + $0x68] sm:$0xff] }
  0x6f   :  { %1354 = vmatmul.mubr.msk.f32.vlgmr.msra.gmra.mrb[0].mxu0 %vm128_vm3, %v112_v31  ;;  %v349_v48 = vld [vmem:[%s2447_s5 + $0x60] sm:$0xff]  ;;  %v351_v51 = vld [vmem:[%s2447_s5 + $0x70] sm:$0xff]  ;;  %v568_v57 = vld [vmem:[#allocation11 + $0x70] sm:$0xff] }
  0x70   :  { %1592 = vmatpush3.bf16.msra.mxu0 %v1589_v50  ;;  %v1581_v50 = vpack.c.bf16 %v350_v49, %v349_v48  ;;  %v1018_v60 = vld [vmem:[%s2451_s9] sm:$0xff]  ;;  %v1024_v23 = vld [vmem:[%s2451_s9 + $0x30] sm:$0xff] }
  0x71   :  { %1540 = vmatpush3.bf16.msra.mxu1 %v1537_v30  ;;  %1594 = vmatprep.subr.bf16.mxu0 %v1593_v52  ;;  %v1244_v63 = vld [vmem:[#allocation9] ss:$0 sm:$0xff] }
  0x72   :  { %1542 = vmatprep.subr.bf16.mxu1 %v1541_v34 }
  0x74   :  { %1596 = vmatpush3.bf16.msra.mxu0 %v1593_v52  ;;  %v352_v52 = vld [vmem:[%s2447_s5 + $0x78] sm:$0xff] }
  0x75   :  { %1544 = vmatpush3.bf16.msra.mxu1 %v1541_v34  ;;  %1598 = vmatprep.subr.bf16.mxu0 %v1597_v55  ;;  %v1585_v53 = vpack.c.bf16 %v352_v52, %v351_v51 }
  0x76   :  { %1546 = vmatprep.subr.bf16.mxu1 %v1545_v37 }
  0x78   :  { %1600 = vmatpush3.bf16.msra.mxu0 %v1597_v55 }
  0x79   :  { %1548 = vmatpush3.bf16.msra.mxu1 %v1545_v37  ;;  %1602 = vmatprep.subr.bf16.mxu0 %v1601_v58  ;;  %v1565_v37 = vpack.c.bf16 %v342_v36, %v341_v35  ;;  %v1032_v35 = vld [vmem:[%s2451_s9 + $0x70] sm:$0xff]  ;;  %v1033_v36 = vld [vmem:[%s2451_s9 + $0x78] sm:$0xff] }
  0x7a   :  { %1550 = vmatprep.subr.bf16.mxu1 %v1549_v40 }
  0x7c   :  { %1604 = vmatpush3.bf16.msra.mxu0 %v1601_v58  ;;  %v569_v58 = vld [vmem:[#allocation11 + $0x78] sm:$0xff] }
  0x7d   :  { %1552 = vmatpush3.bf16.msra.mxu1 %v1549_v40  ;;  %1606 = vmatprep.subr.bf16.mxu0 %v1605_v61  ;;  %v344_v40 = vld [vmem:[%s2447_s5 + $0x38] sm:$0xff]  ;;  %v1617_v59 = vpack.c.bf16 %v569_v58, %v568_v57 }
  0x7e   :  { %1554 = vmatprep.subr.bf16.mxu1 %v1553_v43  ;;  %v1569_v41 = vpack.c.bf16 %v344_v40, %v343_v39  ;;  %v659_v39 = vadd.s32 16, %v2078_v9  ;;  %v2204_v40 = vand.u32 15, %v2078_v9 }
  0x80   :  { %1608 = vmatpush3.bf16.msra.mxu0 %v1605_v61  ;;  %v1019_v61 = vld [vmem:[%s2451_s9 + $0x8] sm:$0xff]  ;;  %v720_v51 = vadd.s32 4294967293, %v2204_v40 }
  0x81   :  { %1556 = vmatpush3.bf16.msra.mxu1 %v1553_v43  ;;  %1610 = vmatprep.subr.bf16.mxu0 %v1609_v0  ;;  %v346_v43 = vld [vmem:[%s2447_s5 + $0x48] sm:$0xff]  ;;  %v1621_v62 = vpack.c.bf16 %v1019_v61, %v1018_v60 }
  0x82   :  { %1558 = vmatprep.subr.bf16.mxu1 %v2075_v46  ;;  %v1573_v44 = vpack.c.bf16 %v346_v43, %v345_v42  ;;  %v2209_v42 = vand.u32 15, %v659_v39  ;;  %vm724_vm10 = vcmp.ge.s32.totalorder %v720_v51, 0 }
  0x84   :  { %1612 = vmatpush3.bf16.msra.mxu0 %v1609_v0 }
  0x85   :  { %1614 = vmatprep.subr.bf16.mxu0 %v1613_v3 }
  0x88   :  { %1616 = vmatpush3.bf16.msra.mxu0 %v1613_v3 }
  0x89   :  { %1618 = vmatprep.subr.bf16.mxu0 %v1617_v59 }
  0x8c   :  { %1620 = vmatpush3.bf16.msra.mxu0 %v1617_v59 }
  0x8d   :  { %1622 = vmatprep.subr.bf16.mxu0 %v1621_v62 }
 0x135   :  { %v1360_v4 = vpop.f32.mrb[0].mxu1 }
 0x136   :  { %v298_v5 = vpop.f32.mrb[1].mxu1  ;;  %v2084_v18 = vadd.f32 %v1360_v4, %v1238_v10  ;;  %v1020_v4 = vld [vmem:[%s2451_s9 + $0x10] sm:$0xff] }
 0x137   :  { %v2086_v19 = vadd.f32 %v1238_v10, %v298_v5  ;;  %v1021_v5 = vld [vmem:[%s2451_s9 + $0x18] sm:$0xff] }
 0x139   :  { %v1363_v7 = vpop.f32.mrb[2].mxu1 }
 0x13a   :  { %v308_v8 = vpop.f32.mrb[3].mxu1  ;;  %v2082_v16 = vadd.f32 %v1363_v7, %v1238_v10 }
 0x13b   :  { %v309_v17 = vadd.f32 %v1238_v10, %v308_v8 }
 0x142   :  { %v198_v13 = vpop.f32.mrb[0].mxu0 }
 0x143   :  { %v199_v14 = vadd.f32 %v1238_v10, %v198_v13  ;;  %v1355_v15 = vpop.f32.mrb[1].mxu0 }
 0x144   :  { %v1023_v15 = vld [vmem:[%s2451_s9 + $0x28] sm:$0xff] }
 0x145   :  { %v320_v20 = vrot.slane %v199_v14, %v319_v11  ;;  %v2088_v21 = vrot.slane %v199_v14, %v323_v12  ;;  %202 = vst [vmem:[#allocation12] sm:$0x3] %v199_v14  ;;  %v1625_v12 = vpack.c.bf16 %v1021_v5, %v1020_v4  ;;  %v1022_v14 = vld [vmem:[%s2451_s9 + $0x20] sm:$0xff] }
 0x147   :  { %v328_v24 = vsub.f32 %v2088_v21, %v2082_v16  ;;  %v336_v25 = vmul.f32 %v2088_v21, %v2082_v16  ;;  %v327_v26 = vsub.f32 %v2088_v21, %v309_v17  ;;  %v335_v27 = vmul.f32 %v2088_v21, %v309_v17 }
 0x148   :  { %v333_v28 = vmul.f32 %v320_v20, %v2086_v19  ;;  %v334_v29 = vmul.f32 %v320_v20, %v2084_v18  ;;  %v325_v30 = vsub.f32 %v320_v20, %v2086_v19  ;;  %v326_v31 = vsub.f32 %v320_v20, %v2084_v18 }
 0x149   :  { %v1014_v33 = vsub.f32 %v2088_v21, %v2086_v19  ;;  %v1015_v34 = vsub.f32 %v2088_v21, %v2084_v18  ;;  %v331_v55 = vand.u32 2147483647, %v327_v26  ;;  %v332_v56 = vand.u32 2147483647, %v328_v24  ;;  %v1025_v24 = vld [vmem:[%s2451_s9 + $0x38] sm:$0xff]  ;;  %v1026_v26 = vld [vmem:[%s2451_s9 + $0x40] sm:$0xff] }
 0x14a   :  { %1396 = vmatprep.mubr.f32.mxu1 %v333_v28  ;;  %v329_v38 = vand.u32 2147483647, %v325_v30  ;;  %v330_v54 = vand.u32 2147483647, %v326_v31  ;;  %v1629_v20 = vpack.c.bf16 %v1023_v15, %v1022_v14  ;;  %v1027_v19 = vld [vmem:[%s2451_s9 + $0x48] sm:$0xff]  ;;  %v1028_v28 = vld [vmem:[%s2451_s9 + $0x50] sm:$0xff] }
 0x14b   :  { %1397 = vmatmul.mubr.f32.vlgmr.msra.gmra.mrb[4].mxu1 %v334_v29  ;;  %v1016_v22 = vand.u32 2147483647, %v1014_v33  ;;  %v1029_v29 = vld [vmem:[%s2451_s9 + $0x58] sm:$0xff]  ;;  %v1030_v31 = vld [vmem:[%s2451_s9 + $0x60] sm:$0xff]  ;;  %v722_v14 = vadd.s32 4294967293, %v2209_v42 }
 0x14c   :  { %1560 = vmatpush3.bf16.msra.mxu1 %v2075_v46  ;;  %1399 = vmatprep.mubr.f32.mxu1 %v335_v27  ;;  %v348_v46 = vld [vmem:[%s2447_s5 + $0x58] sm:$0xff]  ;;  %v1637_v27 = vpack.c.bf16 %v1027_v19, %v1026_v26  ;;  %v1641_v30 = vpack.c.bf16 %v1029_v29, %v1028_v28 }
 0x14d   :  { %1562 = vmatprep.subr.bf16.mxu1 %v1561_v32  ;;  %v1577_v47 = vpack.c.bf16 %v348_v46, %v347_v45  ;;  %vm726_vm11 = vcmp.ge.s32.totalorder %v722_v14, 0 }
 0x14f   :  { %1400 = vmatmul.mubr.f32.gmra.mrb[6].mxu1 %v336_v25  ;;  %v1633_v25 = vpack.c.bf16 %v1025_v24, %v1024_v23 }
 0x150   :  { %1564 = vmatpush3.bf16.msra.mxu1 %v1561_v32  ;;  %1434 = vmatprep.mubr.f32.mxu1 %v329_v38  ;;  %v1031_v32 = vld [vmem:[%s2451_s9 + $0x68] sm:$0xff]  ;;  %v1017_v38 = vand.u32 2147483647, %v1015_v34  ;;  %s1871_s9 = smov 112  }
 0x151   :  { %1566 = vmatprep.subr.bf16.mxu1 %v1565_v37  ;;  %v1645_v33 = vpack.c.bf16 %v1031_v32, %v1030_v31 }
 0x154   :  { %1568 = vmatpush3.bf16.msra.mxu1 %v1565_v37  ;;  %v1649_v37 = vpack.c.bf16 %v1033_v36, %v1032_v35 }
 0x155   :  { %1570 = vmatprep.subr.bf16.mxu1 %v1569_v41 }
 0x158   :  { %1572 = vmatpush3.bf16.msra.mxu1 %v1569_v41 }
 0x159   :  { %1574 = vmatprep.subr.bf16.mxu1 %v1573_v44 }
 0x15c   :  { %1576 = vmatpush3.bf16.msra.mxu1 %v1573_v44 }
 0x15d   :  { %1578 = vmatprep.subr.bf16.mxu1 %v1577_v47 }
 0x160   :  { %1580 = vmatpush3.bf16.msra.mxu1 %v1577_v47 }
 0x161   :  { %1582 = vmatprep.subr.bf16.mxu1 %v1581_v50 }
 0x164   :  { %1584 = vmatpush3.bf16.msra.mxu1 %v1581_v50 }
 0x165   :  { %1586 = vmatprep.subr.bf16.mxu1 %v1585_v53 }
 0x168   :  { %1588 = vmatpush3.bf16.msra.mxu1 %v1585_v53 }
 0x16b   :  { %1435 = vmatmul.mubr.f32.vlgmr.msra.gmra.mrb[4].mxu1 %v330_v54 }
 0x16c   :  { %1437 = vmatprep.mubr.f32.mxu1 %v331_v55 }
 0x16f   :  { %1438 = vmatmul.mubr.f32.gmra.mrb[6].mxu1 %v332_v56 }
 0x23e   :  { %v1436_v0 = vpop.f32.mrb[4].mxu1 }
 0x23f   :  { %v547_v1 = vadd.f32 %v1436_v0, %v1244_v63  ;;  %v520_v2 = vpop.f32.mrb[5].mxu1 }
 0x240   :  { %v546_v3 = vadd.f32 %v1244_v63, %v520_v2 }
 0x241   :  { %v551_v8 = vmax.f32 %v547_v1, 0.0 }
 0x242   :  { %v550_v6 = vmax.f32 %v546_v3, 0.0  ;;  %v1439_v7 = vpop.f32.mrb[6].mxu1 }
 0x243   :  { %v549_v10 = vadd.f32 %v1439_v7, %v1244_v63  ;;  %v530_v11 = vpop.f32.mrb[7].mxu1 }
 0x244   :  { %v548_v13 = vadd.f32 %v1244_v63, %v530_v11  ;;  %1472 = vmatprep.mubr.f32.mxu0 %v550_v6 }
 0x245   :  { %1473 = vmatmul.mubr.f32.vlgmr.msra.gmra.mrb[2].mxu0 %v551_v8  ;;  %v553_v17 = vmax.f32 %v549_v10, 0.0 }
 0x246   :  { %v552_v16 = vmax.f32 %v548_v13, 0.0  ;;  %1624 = vmatpush3.bf16.msra.mxu0 %v1621_v62 }
 0x247   :  { %1626 = vmatprep.subr.bf16.mxu0 %v1625_v12 }
 0x248   :  { %1475 = vmatprep.mubr.f32.mxu0 %v552_v16 }
 0x249   :  { %1476 = vmatmul.mubr.f32.gmra.mrb[4].mxu0 %v553_v17 }
 0x24a   :  { %1628 = vmatpush3.bf16.msra.mxu0 %v1625_v12  ;;  %1510 = vmatprep.mubr.f32.mxu0 %v1016_v22 }
 0x24b   :  { %1630 = vmatprep.subr.bf16.mxu0 %v1629_v20 }
 0x24e   :  { %1632 = vmatpush3.bf16.msra.mxu0 %v1629_v20 }
 0x24f   :  { %1634 = vmatprep.subr.bf16.mxu0 %v1633_v25 }
 0x252   :  { %1636 = vmatpush3.bf16.msra.mxu0 %v1633_v25 }
 0x253   :  { %1638 = vmatprep.subr.bf16.mxu0 %v1637_v27 }
 0x256   :  { %1640 = vmatpush3.bf16.msra.mxu0 %v1637_v27 }
 0x257   :  { %1642 = vmatprep.subr.bf16.mxu0 %v1641_v30 }
 0x25a   :  { %1644 = vmatpush3.bf16.msra.mxu0 %v1641_v30 }
 0x25b   :  { %1646 = vmatprep.subr.bf16.mxu0 %v1645_v33 }
 0x25e   :  { %1648 = vmatpush3.bf16.msra.mxu0 %v1645_v33 }
 0x25f   :  { %1650 = vmatprep.subr.bf16.mxu0 %v1649_v37 }
 0x262   :  { %1652 = vmatpush3.bf16.msra.mxu0 %v1649_v37 }
 0x265   :  { %1511 = vmatmul.mubr.f32.vlgmr.msra.gmra.mrb[6].mxu0 %v1017_v38 }
 0x318   :  { %v2207_v41 = vpop.f32.mrb[2].mxu0 }
 0x319   :  { %v2214_v18 = vpop.f32.mrb[3].mxu0  ;;  %v745_v21 = vrot.slane %v2207_v41, 6  ;;  %v794_v34 = vrot.slane %v2207_v41, 7  ;;  %v863_v43 = vrot.slane %v2207_v41, 1  ;;  %v912_v44 = vrot.slane %v2207_v41, 2 }
 0x31a   :  { %v744_v45 = vrot.slane %v2214_v18, 6  ;;  %v793_v46 = vrot.slane %v2214_v18, 7  ;;  %v862_v47 = vrot.slane %v2214_v18, 1  ;;  %v911_v48 = vrot.slane %v2214_v18, 2 }
 0x31b   :  { %v960_v49 = vrot.slane %v2214_v18, 3  ;;  %v961_v50 = vrot.slane %v2207_v41, 3  ;;  %v711_v8 = vrot.slane %v2214_v18, 5  ;;  %v712_v10 = vrot.slane %v2207_v41, 5 }
 0x31c   :  { %v2228_v52 = vpop.f32.mrb[4].mxu0  ;;  %v2232_v53 = vsel %vm748_vm4, %v744_v45, %v745_v21  ;;  %v2236_v54 = vsel %vm797_vm5, %v793_v46, %v794_v34  ;;  %v2240_v55 = vsel %vm866_vm6, %v862_v47, %v863_v43  ;;  %v2244_v56 = vsel %vm915_vm7, %v911_v48, %v912_v44 }
 0x31d   :  { %v2246_v57 = vpop.f32.mrb[5].mxu0  ;;  %v747_v58 = vrot.slane %v2228_v52, 6  ;;  %v796_v59 = vrot.slane %v2228_v52, 7  ;;  %v865_v60 = vrot.slane %v2228_v52, 1  ;;  %v914_v61 = vrot.slane %v2228_v52, 2 }
 0x31e   :  { %v746_v62 = vrot.slane %v2246_v57, 6  ;;  %v795_v63 = vrot.slane %v2246_v57, 7  ;;  %v864_v0 = vrot.slane %v2246_v57, 1  ;;  %v913_v1 = vrot.slane %v2246_v57, 2 }
 0x31f   :  { %v2258_v2 = vsel %vm748_vm4, %v747_v58, %v744_v45  ;;  %v2262_v3 = vsel %vm797_vm5, %v796_v59, %v793_v46  ;;  %v2266_v4 = vsel %vm866_vm6, %v865_v60, %v862_v47  ;;  %v2270_v5 = vsel %vm915_vm7, %v914_v61, %v911_v48 }
 0x320   :  { %v2274_v6 = vsel %vm748_vm4, %v745_v21, %v746_v62  ;;  %v2278_v7 = vsel %vm748_vm4, %v746_v62, %v747_v58  ;;  %v2284_v11 = vsel %vm797_vm5, %v794_v34, %v795_v63  ;;  %v2288_v12 = vsel %vm797_vm5, %v795_v63, %v796_v59 }
 0x321   :  { %v2292_v13 = vsel %vm866_vm6, %v863_v43, %v864_v0  ;;  %v2297_v15 = vsel %vm866_vm6, %v864_v0, %v865_v60  ;;  %v2301_v16 = vsel %vm915_vm7, %v912_v44, %v913_v1  ;;  %v2305_v17 = vsel %vm915_vm7, %v913_v1, %v914_v61 }
 0x322   :  { %v2309_v20 = vsel %vm964_vm8, %v960_v49, %v961_v50  ;;  %v962_v22 = vrot.slane %v2246_v57, 3  ;;  %v963_v23 = vrot.slane %v2228_v52, 3  ;;  %v2315_v24 = vsel %vm715_vm9, %v711_v8, %v712_v10 }
 0x323   :  { %v714_v25 = vrot.slane %v2228_v52, 5  ;;  %v713_v26 = vrot.slane %v2246_v57, 5 }
 0x324   :  { %v2321_v19 = vsel %vm964_vm8, %v961_v50, %v962_v22  ;;  %v2325_v27 = vsel %vm964_vm8, %v962_v22, %v963_v23  ;;  %v2329_v28 = vsel %vm964_vm8, %v963_v23, %v960_v49 }
 0x325   :  { %v719_v29 = vsel %vm715_vm9, %v714_v25, %v711_v8  ;;  %v717_v30 = vsel %vm715_vm9, %v712_v10, %v713_v26  ;;  %v2341_v33 = vsel %vm715_vm9, %v713_v26, %v714_v25 }
 0x326   :  { %v2335_v31 = vsel %vm724_vm10, %v719_v29, 0.0  ;;  %v2337_v32 = vsel %vm726_vm11, %v717_v30, 0.0 }
 0x338   :  { %v1512_v35 = vpop.f32.mrb[6].mxu0 }
 0x339   :  { %v2343_v36 = vsub.f32 0.0, %v1512_v35  ;;  %v1100_v37 = vpop.f32.mrb[7].mxu0 }
 0x33a   :  { %v1109_v38 = vsub.f32 0.0, %v1100_v37 }
 0x33b   :  { %v1114_v39 = vsel %vm1009_vm12, %v2343_v36, -inf }
 0x33c   :  { %v1111_v21 = vsel %vm1009_vm12, %v1109_v38, -inf }
 0x33d   :  { %1112 = vmax.xlane.f32.xlu0 %v1111_v21  ;;  %v1133_v34 = vmax.f32 %v1111_v21, %v1114_v39 }
 0x33f   :  { %v1134_v59 = vrot.slane %v1133_v34, 4 }
 0x341   :  { %1115 = vmax.xlane.f32.xlu0 %v1114_v39  ;;  %v1135_v60 = vmax.f32 %v1133_v34, %v1134_v59 }
 0x343   :  { %v1136_v61 = vrot.slane %v1135_v60, 2 }
 0x345   :  { %v1137_v62 = vmax.f32 %v1135_v60, %v1136_v61 }
 0x347   :  { %v1138_v63 = vrot.slane %v1137_v62, 1 }
 0x349   :  { %v1139_v0 = vmax.f32 %v1137_v62, %v1138_v63 }
 0x34b   :  { %v1140_v1 = vsub.f32 %v1109_v38, %v1139_v0  ;;  %v1141_v8 = vsub.f32 %v2343_v36, %v1139_v0 }
 0x34d   :  { %v1142_v10 = vmul.f32 1.442695, %v1140_v1  ;;  %v1144_v14 = vmul.f32 1.442695, %v1141_v8 }
 0x3ca   :  { %v1113_v43 = vpop.xlane.xlu0 %1112 }
 0x3cb   :  { %v1117_v44 = vsub.f32 %v1109_v38, %v1113_v43 }
 0x3cd   :  { %v1119_v45 = vmul.f32 1.442695, %v1117_v44 }
 0x3ce   :  { %v1116_v46 = vpop.xlane.xlu0 %1115 }
 0x3cf   :  { %1681 = vpow2.f32 %v1119_v45  ;;  %v1118_v47 = vsub.f32 %v2343_v36, %v1116_v46 }
 0x3d1   :  { %v1121_v48 = vmul.f32 1.442695, %v1118_v47 }
 0x3d3   :  { %1683 = vpow2.f32 %v1121_v48 }
 0x3d4   :  { %1685 = vpow2.f32 %v1142_v10 }
 0x3d5   :  { %1687 = vpow2.f32 %v1144_v14 }
 0x3d9   :  { %v1682_v49 = vpop.eup %1681 }
 0x3da   :  { %v1123_v50 = vsel %vm1009_vm12, %v1682_v49, 0.0 }
 0x3db   :  { %1124 = vadd.xlane.f32.xlu1 %v1123_v50 }
 0x3dd   :  { %v1684_v51 = vpop.eup %1683 }
 0x3de   :  { %v1126_v58 = vsel %vm1009_vm12, %v1684_v51, 0.0  ;;  %v1686_v22 = vpop.eup %1685 }
 0x3df   :  { %1127 = vadd.xlane.f32.xlu1 %v1126_v58  ;;  %v1688_v23 = vpop.eup %1687  ;;  %v1146_v25 = vsel %vm1009_vm12, %v1686_v22, 0.0 }
 0x3e0   :  { %v1147_v26 = vsel %vm1009_vm12, %v1688_v23, 0.0 }
 0x3e1   :  { %v1148_v29 = vadd.f32 %v1147_v26, %v1146_v25 }
 0x3e3   :  { %v1149_v30 = vrot.slane %v1148_v29, 4 }
 0x3e5   :  { %v1150_v35 = vadd.f32 %v1149_v30, %v1148_v29 }
 0x3e7   :  { %v1151_v37 = vrot.slane %v1150_v35, 2 }
 0x3e9   :  { %v1152_v39 = vadd.f32 %v1151_v37, %v1150_v35  ;;  %v804_v35 = vadd.s32 4294967295, %v2209_v42 }
 0x3eb   :  { %v1153_v21 = vrot.slane %v1152_v39, 1  ;;  %vm808_vm0 = vcmp.ge.s32.totalorder %v804_v35, 0 }
 0x3ed   :  { %v1154_v34 = vadd.f32 %v1153_v21, %v1152_v39 }
 0x3ef   :  { %1689 = vrcp.f32 %v1154_v34 }
 0x3f9   :  { %v1690_v45 = vpop.eup %1689 }
 0x3fa   :  { %v1156_v48 = vmul.f32 %v1690_v45, %v1686_v22  ;;  %v1157_v61 = vmul.f32 %v1690_v45, %v1688_v23  ;;  %v753_v23 = vadd.s32 4294967294, %v2204_v40 }
 0x3fc   :  { %vm757_vm14 = vcmp.ge.s32.totalorder %v753_v23, 0 }
 0x3fd   :  { %v769_v30 = vsel %vm757_vm14, %v2258_v2, 0.0 }
 0x468   :  { %v1125_v43 = vpop.xlane.xlu1 %1124 }
 0x469   :  { %1691 = vrcp.f32 %v1125_v43 }
 0x46c   :  { %v1128_v44 = vpop.xlane.xlu1 %1127 }
 0x46d   :  { %1693 = vrcp.f32 %v1128_v44 }
 0x473   :  { %v1692_v46 = vpop.eup %1691 }
 0x474   :  { %v1130_v47 = vmul.f32 %v1692_v46, %v1682_v49 }
 0x476   :  { %v1158_v50 = vadd.f32 %v1156_v48, %v1130_v47  ;;  %v1160_v58 = vmul.f32 %v1156_v48, %v1130_v47 }
 0x477   :  { %v1694_v59 = vpop.eup %1693 }
 0x478   :  { %v1132_v60 = vmul.f32 %v1694_v59, %v1684_v51  ;;  %v1162_v62 = vsub.f32 %v1158_v50, %v1160_v58  ;;  %v755_v51 = vadd.s32 4294967294, %v2209_v42 }
 0x47a   :  { %v1159_v63 = vadd.f32 %v1157_v61, %v1132_v60  ;;  %v1161_v0 = vmul.f32 %v1157_v61, %v1132_v60  ;;  %v1164_v8 = vmul.f32 %v1162_v62, %v1109_v38  ;;  %v1178_v10 = vsel %vm1009_vm12, %v1162_v62, 0.0 }
 0x47b   :  { %vm759_vm13 = vcmp.ge.s32.totalorder %v755_v51, 0 }
 0x47c   :  { %v1163_v1 = vsub.f32 %v1159_v63, %v1161_v0  ;;  %v1166_v49 = vsel %vm1009_vm12, %v1164_v8, 0.0  ;;  %v771_v38 = vsel %vm759_vm13, %v2274_v6, 0.0  ;;  %v660_v6 = vadd.s32 24, %v2078_v9 }
 0x47e   :  { %v1179_v14 = vsel %vm1009_vm12, %v1163_v1, 0.0  ;;  %v1165_v25 = vmul.f32 %v1163_v1, %v2343_v36  ;;  %v802_v36 = vadd.s32 4294967295, %v2204_v40  ;;  %v820_v40 = vsel %vm808_vm0, %v2284_v11, 0.0 }
 0x47f   :  { %v1180_v26 = vadd.f32 %v1179_v14, %v1178_v10 }
 0x480   :  { %v1167_v22 = vsel %vm1009_vm12, %v1165_v25, 0.0  ;;  %vm806_vm15 = vcmp.ge.s32.totalorder %v802_v36, 0 }
 0x481   :  { %1181 = vadd.xlane.f32.xlu1 %v1180_v26  ;;  %v1168_v29 = vadd.f32 %v1167_v22, %v1166_v49  ;;  %v818_v37 = vsel %vm806_vm15, %v2262_v3, 0.0  ;;  %v686_v3 = vand.u32 15, %v660_v6 }
 0x483   :  { %1169 = vadd.xlane.f32.xlu0 %v1168_v29  ;;  %v972_v11 = vadd.s32 3, %v686_v3 }
 0x485   :  { %vm980_vm6 = vcmp.lt.s32.totalorder %v972_v11, 16 }
 0x492   :  { %779 = vrot.lane.b32.xlu1 %v2232_v53, %s1871_s9  ;;  %v658_v53 = vadd.s32 8, %v2078_v9 }
 0x494   :  { %v672_v2 = vand.u32 15, %v658_v53 }
 0x496   :  { %781 = vrot.lane.b32.xlu1 %v771_v38, %s1871_s9  ;;  %v872_v42 = vadd.s32 1, %v672_v2  ;;  %v921_v9 = vadd.s32 2, %v672_v2 }
 0x498   :  { %vm880_vm1 = vcmp.lt.s32.totalorder %v872_v42, 16  ;;  %vm929_vm3 = vcmp.lt.s32.totalorder %v921_v9, 16 }
 0x499   :  { %777 = vrot.lane.b32.xlu0 %v769_v30, %s1871_s9 }
 0x49a   :  { %783 = vrot.lane.b32.xlu1 %v2278_v7, %s1871_s9  ;;  %v888_v7 = vsel %vm880_vm1, %v2292_v13, 0.0 }
 0x49d   :  { %826 = vrot.lane.b32.xlu0 %v818_v37, %s1872_s16 }
 0x49e   :  { %828 = vrot.lane.b32.xlu1 %v2236_v54, %s1872_s16  ;;  %v874_v54 = vadd.s32 1, %v686_v3 }
 0x4a0   :  { %vm882_vm2 = vcmp.lt.s32.totalorder %v874_v54, 16 }
 0x4a1   :  { %830 = vrot.lane.b32.xlu0 %v820_v40, %s1872_s16 }
 0x4a2   :  { %832 = vrot.lane.b32.xlu1 %v2288_v12, %s1872_s16 }
 0x4a5   :  { %846 = vrot.lane.b32.xlu0 %v2214_v18, %s1873_s18  ;;  %v923_v18 = vadd.s32 2, %v686_v3 }
 0x4a6   :  { %848 = vrot.lane.b32.xlu1 %v2207_v41, %s1873_s18  ;;  %v890_v41 = vsel %vm882_vm2, %v2266_v4, 0.0 }
 0x4a7   :  { %vm931_vm4 = vcmp.lt.s32.totalorder %v923_v18, 16 }
 0x4a9   :  { %850 = vrot.lane.b32.xlu0 %v2246_v57, %s1873_s18  ;;  %v939_v57 = vsel %vm931_vm4, %v2270_v5, 0.0 }
 0x4aa   :  { %852 = vrot.lane.b32.xlu1 %v2228_v52, %s1873_s18  ;;  %v937_v52 = vsel %vm929_vm3, %v2301_v16, 0.0 }
 0x4ad   :  { %895 = vrot.lane.b32.xlu0 %v2240_v55, %s1874_s20  ;;  %v970_v55 = vadd.s32 3, %v672_v2 }
 0x4ae   :  { %897 = vrot.lane.b32.xlu1 %v888_v7, %s1874_s20 }
 0x4af   :  { %vm978_vm5 = vcmp.lt.s32.totalorder %v970_v55, 16 }
 0x4b0   :  { %v986_v4 = vsel %vm978_vm5, %v2321_v19, 0.0 }
 0x4b1   :  { %899 = vrot.lane.b32.xlu0 %v2297_v15, %s1874_s20 }
 0x4b2   :  { %901 = vrot.lane.b32.xlu1 %v890_v41, %s1874_s20 }
 0x4b5   :  { %944 = vrot.lane.b32.xlu0 %v2244_v56, %s1875_s22  ;;  %v988_v56 = vsel %vm980_vm6, %v2329_v28, 0.0 }
 0x4b6   :  { %946 = vrot.lane.b32.xlu1 %v937_v52, %s1875_s22 }
 0x4b9   :  { %948 = vrot.lane.b32.xlu0 %v2305_v17, %s1875_s22 }
 0x4ba   :  { %950 = vrot.lane.b32.xlu1 %v939_v57, %s1875_s22 }
 0x4bd   :  { %993 = vrot.lane.b32.xlu0 %v2309_v20, %s1876_s23 }
 0x4be   :  { %995 = vrot.lane.b32.xlu1 %v986_v4, %s1876_s23 }
 0x4c1   :  { %997 = vrot.lane.b32.xlu0 %v2325_v27, %s1876_s23 }
 0x4c2   :  { %999 = vrot.lane.b32.xlu1 %v988_v56, %s1876_s23 }
 0x50e   :  { %v1182_v12 = vpop.xlane.xlu1 %1181 }
 0x50f   :  { %v1183_v13 = vrot.slane %v1182_v12, 4 }
 0x510   :  { %v1170_v15 = vpop.xlane.xlu0 %1169 }
 0x511   :  { %v1184_v16 = vadd.f32 %v1183_v13, %v1182_v12  ;;  %v1171_v5 = vrot.slane %v1170_v15, 4 }
 0x512   :  { %v780_v17 = vpop.permute.xlu1 %779 }
 0x513   :  { %v1185_v39 = vrot.slane %v1184_v16, 2  ;;  %v1172_v21 = vadd.f32 %v1171_v5, %v1170_v15 }
 0x514   :  { %v778_v34 = vpop.permute.xlu0 %777 }
 0x515   :  { %v1173_v20 = vrot.slane %v1172_v21, 2  ;;  %v1186_v19 = vadd.f32 %v1185_v39, %v1184_v16 }
 0x516   :  { %v782_v43 = vpop.permute.xlu1 %781 }
 0x517   :  { %1818 = shalt.err (!%p1815_p2)
}
 0x518   :  { %s1819_s29 = scalar_lea.hbm %s2455_s13, 32 }
 0x519   :  { %p1820_p3 = scmp.ne.s32.totalorder %s2455_s13, %s1819_s29  ;;  %p1823_p4 = scmp.lt.u32.totalorder %s1819_s29, %s2455_s13 }
 0x51b   :  { %p1825_p5 = pnand %p1823_p4, %p1820_p3 }
 0x51d   :  { %1828 = shalt.err (!%p1825_p5)
}
 0x51e   :  { %1210 = dma.vmem_to_hbm [thread:$0]  %s1208_s8, 32, %s2455_s13, [#allocation5]   ;;  %v1174_v27 = vadd.f32 %v1173_v20, %v1172_v21  ;;  %v827_v28 = vpop.permute.xlu0 %826  ;;  %v1187_v44 = vrot.slane %v1186_v19, 1  ;;  %v784_v46 = vpop.permute.xlu1 %783  ;;  %v709_v1 = vstv %s2452_s10  ;;  %v1197_v21 = vld [vmem:[%s2454_s12] sm:$0x1]  ;;  %vm1199_vm7 = vcmask 24576  }
 0x51f   :  { %v740_v10 = vadd.f32 %v2335_v31, %v709_v1  ;;  %v742_v49 = vadd.f32 %v2337_v32, %v709_v1  ;;  %v741_v51 = vadd.f32 %v2315_v24, %v709_v1  ;;  %v743_v40 = vadd.f32 %v2341_v33, %v709_v1  ;;  %s1878_s2 = smov [#allocation13]  }
 0x520   :  { %v1175_v45 = vrot.slane %v1174_v27, 1  ;;  %v1188_v50 = vadd.f32 %v1187_v44, %v1186_v19  ;;  %s1219_s3 = sshll.u32 %s1878_s2, 4  ;;  %s1220_s3 = int_to_ptr.vmem [resolvable:$true] %s1219_s3 }
 0x521   :  { %v789_v25 = vadd.f32 %v778_v34, %v740_v10  ;;  %v791_v23 = vadd.f32 %v782_v43, %v742_v49  ;;  %v790_v30 = vadd.f32 %v780_v17, %v741_v51  ;;  %v792_v3 = vadd.f32 %v784_v46, %v743_v40  ;;  %v1194_v17 = vld [vmem:[%s2453_s11] sm:$0x1]  ;;  %s1833_s29 = scalar_lea.vmem %s1220_s3, 32  ;;  %p1834_p7 = scmp.lt.s32.totalorder %s1220_s3, %s1220_s3 }
 0x522   :  { %v1176_v47 = vadd.f32 %v1175_v45, %v1174_v27  ;;  %v831_v48 = vpop.permute.xlu0 %830  ;;  %v829_v58 = vpop.permute.xlu1 %828 }
 0x523   :  { %v838_v22 = vadd.f32 %v827_v28, %v789_v25  ;;  %v840_v35 = vadd.f32 %v831_v48, %v791_v23  ;;  %v839_v2 = vadd.f32 %v829_v58, %v790_v30 }
 0x524   :  { %1657 = vpush %v1176_v47 }
 0x525   :  { %1659 = vpush %v1188_v50 }
 0x526   :  { %v847_v59 = vpop.permute.xlu0 %846  ;;  %v833_v60 = vpop.permute.xlu1 %832 }
 0x527   :  { %v858_v38 = vadd.f32 %v847_v59, %v838_v22  ;;  %v841_v41 = vadd.f32 %v833_v60, %v792_v3 }
 0x52a   :  { %v851_v61 = vpop.permute.xlu0 %850  ;;  %v849_v62 = vpop.permute.xlu1 %848 }
 0x52b   :  { %v860_v31 = vadd.f32 %v851_v61, %v840_v35  ;;  %v859_v54 = vadd.f32 %v849_v62, %v839_v2 }
 0x52e   :  { %v896_v63 = vpop.permute.xlu0 %895  ;;  %v853_v0 = vpop.permute.xlu1 %852 }
 0x52f   :  { %v907_v37 = vadd.f32 %v896_v63, %v858_v38  ;;  %v861_v55 = vadd.f32 %v853_v0, %v841_v41 }
 0x532   :  { %v900_v8 = vpop.permute.xlu0 %899  ;;  %v898_v14 = vpop.permute.xlu1 %897 }
 0x533   :  { %v909_v32 = vadd.f32 %v900_v8, %v860_v31  ;;  %v908_v24 = vadd.f32 %v898_v14, %v859_v54 }
 0x536   :  { %v945_v26 = vpop.permute.xlu0 %944  ;;  %v902_v29 = vpop.permute.xlu1 %901 }
 0x537   :  { %v956_v6 = vadd.f32 %v945_v26, %v907_v37  ;;  %v910_v4 = vadd.f32 %v902_v29, %v861_v55 }
 0x53a   :  { %v949_v36 = vpop.permute.xlu0 %948  ;;  %v947_v53 = vpop.permute.xlu1 %946 }
 0x53b   :  { %v958_v18 = vadd.f32 %v949_v36, %v909_v32  ;;  %v957_v33 = vadd.f32 %v947_v53, %v908_v24 }
 0x53e   :  { %v994_v42 = vpop.permute.xlu0 %993  ;;  %v951_v9 = vpop.permute.xlu1 %950 }
 0x53f   :  { %v1005_v7 = vadd.f32 %v994_v42, %v956_v6  ;;  %v959_v12 = vadd.f32 %v951_v9, %v910_v4 }
 0x541   :  { %1010 = vst.msk [vmem:[%s2456_s14] sm:$0xff] %vm1009_vm12, %v1005_v7 }
 0x542   :  { %v998_v52 = vpop.permute.xlu0 %997  ;;  %v996_v11 = vpop.permute.xlu1 %995 }
 0x543   :  { %v1007_v57 = vadd.f32 %v998_v52, %v958_v18  ;;  %v1006_v56 = vadd.f32 %v996_v11, %v957_v33 }
 0x545   :  { %1012 = vst.msk [vmem:[%s2456_s14 + $0x10] sm:$0xff] %vm1009_vm12, %v1007_v57  ;;  %1011 = vst.msk [vmem:[%s2456_s14 + $0x8] sm:$0xff] %vm1009_vm12, %v1006_v56 }
 0x546   :  { %v1000_v13 = vpop.permute.xlu1 %999 }
 0x547   :  { %v1008_v15 = vadd.f32 %v1000_v13, %v959_v12 }
 0x549   :  { %1013 = vst.msk [vmem:[%s2456_s14 + $0x18] sm:$0xff] %vm1009_vm12, %v1008_v15  ;;  %s1829_s14 = scalar_lea.vmem %s1220_s3, 16 }
 0x54a   :  { %p1830_p6 = scmp.ne.s32.totalorder %s1220_s3, %s1829_s14  ;;  %p1835_p8 = scmp.lt.s32.totalorder %s1833_s29, %s1829_s14 }
 0x54c   :  { %p1836_p9 = por %p1835_p8, %p1834_p7 }
 0x54e   :  { %p1837_p10 = pnand %p1836_p9, %p1830_p6 }
 0x555   :  { %s1658_s16 = spop %1657 }
 0x556   :  { %s1660_s18 = spop %1659 }
 0x557   :  { %v1190_v16 = vstv %s1660_s18 }
 0x558   :  { %1695 = vrcp.f32 %v1190_v16 }
 0x562   :  { %v1696_v5 = vpop.eup %1695 }
 0x563   :  { %1661 = vpush %v1696_v5 }
 0x594   :  { %s1662_s20 = spop %1661 }
 0x595   :  { %s1193_s22 = smul.f32 %s1662_s20, %s1658_s16 }
 0x597   :  { %v1195_v39 = vstv %s1193_s22 }
 0x598   :  { %v1196_v34 = vmul.f32 %v1195_v39, %v1194_v17 }
 0x59a   :  { %v1198_v20 = vadd.f32 %v1197_v21, %v1196_v34 }
 0x59c   :  { %1200 = vst.msk [vmem:[#allocation13] sm:$0x1] %vm1199_vm7, %v1198_v20 }
 0x59d   :  { %1840 = shalt.err (!%p1837_p10)
}
 0x59e   :  { %s1841_s25 = scalar_lea.hbm %s2457_s15, 16 }
 0x59f   :  { %p1842_p11 = scmp.ne.s32.totalorder %s2457_s15, %s1841_s25  ;;  %p1845_p12 = scmp.lt.u32.totalorder %s1841_s25, %s2457_s15 }
 0x5a1   :  { %p1847_p13 = pnand %p1845_p12, %p1842_p11 }
 0x5a3   :  { %1850 = shalt.err (!%p1847_p13)
}
 0x5a4   :  { %1222 = dma.vmem_to_hbm [thread:$0]  %s1220_s3, 16, %s2457_s15, [#allocation14]  }
 0x5a5   :  { %1857 = dma.done.wait [#allocation5], 32  }
 0x5a6   :  { %1858 = vsyncadd [#allocation5], 4294967264 }
 0x5a7   :  { %1859 = dma.done.wait [#allocation14], 16  }
 0x5a8   :  { %1860 = vsyncadd [#allocation14], 4294967280 }
 0x5a9   :  { %1231 = vsyncpa [#allocation4], 1 }
 0x5aa   :  { %1232 = vsyncpa [#allocation7], 1 }
 0x5ab   :  { %1233 = vsyncpa [#allocation10], 1 }
 0x5ac   :  { %1234 = vsyncpa [#allocation5], 1 }
 0x5ad   :  { %1235 = vsyncpa [#allocation14], 1 }

</bundles_post_ra>
